<compile_context>
chip_gen: v5e
topology: v5e:2x2
jax: 0.10.0
libtpu: 0.0.40
codegen_flags: <defaults>
</compile_context>

<pallas_src>
import math

import jax
import jax.numpy as jnp
from jax.experimental import pallas as pl
from jax.experimental.pallas import tpu as pltpu

EPS = float(jnp.finfo(jnp.float32).eps)   # torch.finfo(torch.float).eps
BN_EPS = 1e-5                             # nn.BatchNorm1d default eps
NEG_SLOPE = 0.01                          # nn.LeakyReLU default slope
LOG_2PI = math.log(2.0 * math.pi)
TWO_PI = 2.0 * math.pi
INV_2PI = 1.0 / TWO_PI
HALF_PI = 0.5 * math.pi
PI = math.pi

HIDDEN = 32                    # padded feature width of every layer / slab columns
N_WROWS = 9 * HIDDEN           # weight slab rows (first enc layer uses 2H of them)
N_LAYERS = 8                   # 3 enc + enc head + 3 dec + dec head
MATMUL_DTYPE = jnp.bfloat16    # flip to jnp.float32 if full matmul precision needed

# Abramowitz & Stegun 4.4.49 minimax polynomial for atan(a), a in [0,1]
# (|err| <= 2e-8); Horner order: highest degree first.
_ATAN_C = (-0.0040540580, 0.0218612288, -0.0559098861, 0.0964200441,
           -0.1390853351, 0.1994653599, -0.3332985605, 0.9999993329)


def _softplus(x):
    # numerically-stable softplus, matches nn.Softplus() semantics
    return jnp.maximum(x, 0.0) + jnp.log(1.0 + jnp.exp(-jnp.abs(x)))


def _atan_poly(a):
    s = a * a
    p = jnp.float32(_ATAN_C[0])
    for c in _ATAN_C[1:]:
        p = p * s + jnp.float32(c)
    return p * a


def _atan2(y, x):
    """atan2 built from VPU-friendly ops (abs/min/max/div/select + poly)."""
    ax, ay = jnp.abs(x), jnp.abs(y)
    mx = jnp.maximum(ax, ay)
    mn = jnp.minimum(ax, ay)
    a = mn / jnp.maximum(mx, jnp.float32(1e-30))
    r = _atan_poly(a)
    r = jnp.where(ay > ax, jnp.float32(HALF_PI) - r, r)
    r = jnp.where(x < 0.0, jnp.float32(PI) - r, r)
    return jnp.where(y < 0.0, -r, r)


def vae_forward(k, noise, wslab, vslab, *, latent):
    """VAE.forward(k) -> ({'z', 'kappa'}, NLL, KL, AUX, lamb)."""
    B, K = k.shape
    L, H = latent, HIDDEN
    assert K + L <= H and 2 * K <= H and 2 * L <= H, "padded slab width too small"
    out_w = L + K + 2              # [ z | kappa | KL | NLL ]

    # Single (B, H) input slab: [ k | noise | zero pad ].
    # cos(noise)/cos(0)=1 and sin(noise)/sin(0) only hit zero-padded weight rows
    # of the first encoder layer, so the first matmul is exact.
    kin = jnp.concatenate(
        [k, noise, jnp.zeros((B, H - K - L), jnp.float32)], axis=1)

    def kernel(kin_ref, w_ref, vec_ref, out_ref):
        kin_v = kin_ref[...]                       # (B, H) f32
        k_raw = kin_v[:, 0:K]                      # ground-truth angles
        eps_n = kin_v[:, K:K + L]                  # N(0,1) noise

        def mm(x, off, rows):
            w = w_ref[off:off + rows, :]           # static, aligned slab slice
            return jnp.dot(x.astype(w.dtype), w,
                           preferred_element_type=jnp.float32)

        def gamma(l):
            return vec_ref[3 * l + 1:3 * l + 2, :]

        def beta(l):
            return vec_ref[3 * l + 2:3 * l + 3, :]

        def bias(l):
            return vec_ref[3 * l:3 * l + 1, :]

        def bn_lrelu(x, l):
            # nn.BatchNorm1d training mode (batch stats, biased variance),
            # one-pass form; the preceding Linear bias is omitted because it
            # cancels exactly inside BatchNorm.
            mean = jnp.mean(x, axis=0, keepdims=True)
            ex2 = jnp.mean(x * x, axis=0, keepdims=True)
            var = ex2 - mean * mean
            scale = gamma(l) * jax.lax.rsqrt(var + BN_EPS)
            shift = beta(l) - mean * scale
            y = x * scale + shift
            return jnp.where(y >= 0.0, y, NEG_SLOPE * y)   # LeakyReLU

        # ---------------- encoder ----------------
        # encode(): interleaved [cos k, sin k] input == one merged matmul with
        # the cos-rows / sin-rows of W1 stacked in slab rows [0, 2H).
        x0 = jnp.concatenate([jnp.cos(kin_v), jnp.sin(kin_v)], axis=1)  # (B, 2H)
        h = bn_lrelu(mm(x0, 0, 2 * H), 0)
        h = bn_lrelu(mm(h, 2 * H, H), 1)
        h = bn_lrelu(mm(h, 3 * H, H), 2)

        # fused (mu_z | var_z) head
        head = mm(h, 4 * H, H) + bias(3)
        mu_z = head[:, 0:L]
        var_z = _softplus(head[:, L:2 * L])
        log_var = jnp.log(var_z + EPS)             # single log, reused in KL
        std = jnp.sqrt(var_z + EPS)

        # Normal(mu_z, std).rsample() with host-supplied N(0,1) noise
        z = mu_z + std * eps_n

        # KL( N(mu_z, std) || N(0,1) ), summed over latent dim, mean over batch
        kl_el = 0.5 * (var_z + EPS + mu_z * mu_z - log_var - 1.0)
        kl = jnp.sum(jnp.sum(kl_el, axis=1, keepdims=True),
                     axis=0, keepdims=True) * jnp.float32(1.0 / B)     # (1,1)

        # ---------------- decoder ----------------
        d = bn_lrelu(mm(z, 5 * H, L), 4)
        d = bn_lrelu(mm(d, 6 * H, H), 5)
        d = bn_lrelu(mm(d, 7 * H, H), 6)
        # fused (cos-logits | sin-logits) head (de-interleaved column layout)
        t = jnp.tanh(mm(d, 8 * H, H) + bias(7))
        mu_k = _atan2(t[:, K:2 * K], t[:, 0:K])    # (B, K), in [-pi, pi]

        # ---- wrapped-Gaussian recon NLL (fused epilogue) ----
        # atan2(sin(d), cos(d)) == wrap d into [-pi, pi): done directly.
        diff = k_raw - mu_k
        wrapped = diff - TWO_PI * jnp.floor(diff * INV_2PI + 0.5)
        nll = (jnp.sum(jnp.sum(0.5 * wrapped * wrapped, axis=1, keepdims=True),
                       axis=0, keepdims=True) * jnp.float32(1.0 / B)
               + jnp.float32(0.5 * K * LOG_2PI))                        # (1,1)

        # ---- single packed lane-dense output, one store ----
        out_ref[...] = jnp.concatenate(
            [z, mu_k,
             jnp.broadcast_to(kl, (B, 1)),
             jnp.broadcast_to(nll, (B, 1))], axis=1)

    packed = pl.pallas_call(
        kernel,
        out_shape=jax.ShapeDtypeStruct((B, out_w), jnp.float32),
        grid=(1,),
        in_specs=[
            pl.BlockSpec((B, H), lambda i: (0, 0)),          # [k|noise|pad]
            pl.BlockSpec(wslab.shape, lambda i: (0, 0)),     # weight slab (bf16)
            pl.BlockSpec(vslab.shape, lambda i: (0, 0)),     # bias/BN slab (f32)
        ],
        out_specs=pl.BlockSpec((B, out_w), lambda i: (0, 0)),
        compiler_params=pltpu.CompilerParams(
            dimension_semantics=("arbitrary",)),
    )(kin, wslab, vslab)

    z = packed[:, 0:L]
    mu_k = packed[:, L:L + K]
    kl = packed[0, L + K]
    nll = packed[0, L + K + 1]

    aux = jnp.array([0.0], dtype=jnp.float32)    # mean_only=True branch
    lamb = None                                  # mean_only=True branch
    return {"z": z, "kappa": mu_k}, nll, kl, aux, lamb


def init_param_slabs(key, num_kappa, latent, hidden=HIDDEN):
    """Deterministic synthetic parameters packed into two contiguous slabs.

    weight slab : (9*hidden, hidden), MATMUL_DTYPE.
        rows [0, 2H)   : enc Linear0 — rows 0..K-1 = cos-input rows (W1[:,0::2].T),
                         rows H..H+K-1 = sin-input rows (W1[:,1::2].T), rest zero
        rows [2H, 3H)  : enc Linear1      rows [3H, 4H) : enc Linear2
        rows [4H, 5H)  : enc head (cols 0..2L-1 = mu|var)
        rows [5H, 6H)  : dec Linear0 (rows 0..L-1 used)
        rows [6H, 7H)  : dec Linear1      rows [7H, 8H) : dec Linear2
        rows [8H, 9H)  : dec head (cols 0..K-1 = cos logits, K..2K-1 = sin logits)
    vector slab : (3*8, hidden) f32 — rows 3*l+{0,1,2} = bias / BN-gamma / BN-beta
        of logical layer l (bias unused for BN layers, gamma/beta unused for heads).
    A real checkpoint converter would repack nn.Linear / nn.BatchNorm1d parameters
    into exactly this layout (keeping the padding rows/cols exactly zero).
    """
    K, L, H = num_kappa, latent, hidden
    assert K + L <= H and 2 * K <= H and 2 * L <= H
    keys = iter(jax.random.split(key, 32))

    def lin_w(fan_in, fan_out):
        return (jax.random.normal(next(keys), (fan_in, fan_out), jnp.float32)
                / jnp.sqrt(jnp.float32(fan_in)))

    def bias(n):
        return 0.1 * jax.random.normal(next(keys), (n,), jnp.float32)

    wslab = jnp.zeros((N_WROWS, H), jnp.float32)
    # enc Linear0, cos/sin halves
    wslab = wslab.at[0:K, 0:H].set(lin_w(K, H))
    wslab = wslab.at[H:H + K, 0:H].set(lin_w(K, H))
    # remaining blocks: (offset, fan_in, fan_out)
    blocks = [(2 * H, H, H), (3 * H, H, H), (4 * H, H, 2 * L),
              (5 * H, L, H), (6 * H, H, H), (7 * H, H, H), (8 * H, H, 2 * K)]
    for off, fi, fo in blocks:
        wslab = wslab.at[off:off + fi, 0:fo].set(lin_w(fi, fo))
    wslab = wslab.astype(MATMUL_DTYPE)

    b_real = [bias(H), bias(H), bias(H), bias(2 * L),
              bias(H), bias(H), bias(H), bias(2 * K)]
    bn_layers = (0, 1, 2, 4, 5, 6)
    vslab = jnp.zeros((3 * N_LAYERS, H), jnp.float32)
    for l, b in enumerate(b_real):
        vslab = vslab.at[3 * l, 0:b.shape[0]].set(b)
        if l in bn_layers:
            vslab = vslab.at[3 * l + 1, :].set(1.0)   # gamma init (beta stays 0)
    return wslab, vslab


if __name__ == "__main__":
    # Hyper-params consistent with the module:
    #   bond_lengths has 3 entries -> length = 9
    #   num_kappa = 2 * 9 - 5 = 13, in_features = 26
    #   latent_features = 8, encoder_list = decoder_list = [32, 32, 32]
    B = 8
    num_kappa = 13
    latent = 8

    root = jax.random.PRNGKey(0)
    k_key, n_key, p_key = jax.random.split(root, 3)
    k = jax.random.uniform(k_key, (B, num_kappa), jnp.float32,
                           minval=-math.pi, maxval=math.pi)
    noise = jax.random.normal(n_key, (B, latent), jnp.float32)
    wslab, vslab = init_param_slabs(p_key, num_kappa, latent)

    fwd = jax.jit(vae_forward, static_argnames=("latent",))
    out, nll, kl, aux, lamb = fwd(k, noise, wslab, vslab, latent=latent)
    jax.block_until_ready((out, nll, kl, aux))
    print("KERNEL_OK")
</pallas_src>

<mosaic_0001>
module attributes {stable_mosaic.version = 11 : i64} {
  func.func @kernel(%arg0: i32, %arg1: memref<8x32xf32, #tpu.memory_space<vmem>>, %arg2: memref<288x32xbf16, #tpu.memory_space<vmem>>, %arg3: memref<24x32xf32, #tpu.memory_space<vmem>>, %arg4: memref<8x23xf32, #tpu.memory_space<vmem>>) attributes {dimension_semantics = [#tpu.dimension_semantics<arbitrary>], iteration_bounds = array<i64: 1>, scalar_prefetch = 0 : i64, scratch_operands = 0 : i64, tpu.core_type = #tpu.core_type<tc>, window_params = [{pipeline_mode = #tpu.pipeline_mode<synchronous>, transform_indices = @transform_0, window_bounds = array<i64: 8, 32>}, {pipeline_mode = #tpu.pipeline_mode<synchronous>, transform_indices = @transform_1, window_bounds = array<i64: 288, 32>}, {pipeline_mode = #tpu.pipeline_mode<synchronous>, transform_indices = @transform_2, window_bounds = array<i64: 24, 32>}, {pipeline_mode = #tpu.pipeline_mode<synchronous>, transform_indices = @transform_3, window_bounds = array<i64: 8, 23>}]} {
    %c0 = arith.constant 0 : index
    %c0_0 = arith.constant 0 : index
    %0 = vector.load %arg1[%c0, %c0_0] : memref<8x32xf32, #tpu.memory_space<vmem>>, vector<8x32xf32>
    %1 = vector.extract_strided_slice %0 {offsets = [0, 0], sizes = [8, 13], strides = [1, 1]} : vector<8x32xf32> to vector<8x13xf32>
    %2 = vector.extract_strided_slice %0 {offsets = [0, 13], sizes = [8, 8], strides = [1, 1]} : vector<8x32xf32> to vector<8x8xf32>
    %3 = math.cos %0 : vector<8x32xf32>
    %4 = math.sin %0 : vector<8x32xf32>
    %5 = tpu.concatenate %3, %4 in 1 : vector<8x32xf32>, vector<8x32xf32> -> vector<8x64xf32>
    %c0_1 = arith.constant 0 : index
    %c0_2 = arith.constant 0 : index
    %6 = vector.load %arg2[%c0_1, %c0_2] : memref<288x32xbf16, #tpu.memory_space<vmem>>, vector<64x32xbf16>
    %7 = arith.truncf %5 : vector<8x64xf32> to vector<8x64xbf16>
    %cst = arith.constant dense<0.000000e+00> : vector<8x32xf32>
    %8 = tpu.matmul %7, %6, %cst {dimension_numbers = #tpu.dot_dimension_numbers<[1], [0], [0], [1], [0, 0, 1, 1], [], []>} : vector<8x64xbf16>, vector<64x32xbf16>, vector<8x32xf32> -> vector<8x32xf32>
    %cst_3 = arith.constant dense<0.000000e+00> : vector<32xf32>
    %9 = vector.multi_reduction <add>, %8, %cst_3 [0] : vector<8x32xf32> to vector<32xf32>
    %10 = vector.shape_cast %9 : vector<32xf32> to vector<1x32xf32>
    %cst_4 = arith.constant 8.000000e+00 : f32
    %11 = vector.broadcast %cst_4 : f32 to vector<1x32xf32>
    %12 = arith.divf %10, %11 : vector<1x32xf32>
    %13 = arith.mulf %8, %8 : vector<8x32xf32>
    %cst_5 = arith.constant dense<0.000000e+00> : vector<32xf32>
    %14 = vector.multi_reduction <add>, %13, %cst_5 [0] : vector<8x32xf32> to vector<32xf32>
    %15 = vector.shape_cast %14 : vector<32xf32> to vector<1x32xf32>
    %cst_6 = arith.constant 8.000000e+00 : f32
    %16 = vector.broadcast %cst_6 : f32 to vector<1x32xf32>
    %17 = arith.divf %15, %16 : vector<1x32xf32>
    %18 = arith.mulf %12, %12 : vector<1x32xf32>
    %19 = arith.subf %17, %18 : vector<1x32xf32>
    %c1 = arith.constant 1 : index
    %c0_7 = arith.constant 0 : index
    %20 = vector.load %arg3[%c1, %c0_7] : memref<24x32xf32, #tpu.memory_space<vmem>>, vector<1x32xf32>
    %cst_8 = arith.constant 9.99999974E-6 : f32
    %21 = vector.broadcast %cst_8 : f32 to vector<1x32xf32>
    %22 = arith.addf %19, %21 : vector<1x32xf32>
    %23 = math.rsqrt %22 : vector<1x32xf32>
    %24 = arith.mulf %20, %23 : vector<1x32xf32>
    %c2 = arith.constant 2 : index
    %c0_9 = arith.constant 0 : index
    %25 = vector.load %arg3[%c2, %c0_9] : memref<24x32xf32, #tpu.memory_space<vmem>>, vector<1x32xf32>
    %26 = arith.mulf %12, %24 : vector<1x32xf32>
    %27 = arith.subf %25, %26 : vector<1x32xf32>
    %28 = vector.broadcast %24 : vector<1x32xf32> to vector<8x32xf32>
    %29 = arith.mulf %8, %28 : vector<8x32xf32>
    %30 = vector.broadcast %27 : vector<1x32xf32> to vector<8x32xf32>
    %31 = arith.addf %29, %30 : vector<8x32xf32>
    %cst_10 = arith.constant 0.000000e+00 : f32
    %32 = vector.broadcast %cst_10 : f32 to vector<8x32xf32>
    %33 = arith.cmpf oge, %31, %32 : vector<8x32xf32>
    %cst_11 = arith.constant 0.00999999977 : f32
    %34 = vector.broadcast %cst_11 : f32 to vector<8x32xf32>
    %35 = arith.mulf %34, %31 : vector<8x32xf32>
    %36 = arith.select %33, %31, %35 : vector<8x32xi1>, vector<8x32xf32>
    %c64 = arith.constant 64 : index
    %c0_12 = arith.constant 0 : index
    %37 = vector.load %arg2[%c64, %c0_12] : memref<288x32xbf16, #tpu.memory_space<vmem>>, vector<32x32xbf16>
    %38 = arith.truncf %36 : vector<8x32xf32> to vector<8x32xbf16>
    %cst_13 = arith.constant dense<0.000000e+00> : vector<8x32xf32>
    %39 = tpu.matmul %38, %37, %cst_13 {dimension_numbers = #tpu.dot_dimension_numbers<[1], [0], [0], [1], [0, 0, 1, 1], [], []>} : vector<8x32xbf16>, vector<32x32xbf16>, vector<8x32xf32> -> vector<8x32xf32>
    %cst_14 = arith.constant dense<0.000000e+00> : vector<32xf32>
    %40 = vector.multi_reduction <add>, %39, %cst_14 [0] : vector<8x32xf32> to vector<32xf32>
    %41 = vector.shape_cast %40 : vector<32xf32> to vector<1x32xf32>
    %cst_15 = arith.constant 8.000000e+00 : f32
    %42 = vector.broadcast %cst_15 : f32 to vector<1x32xf32>
    %43 = arith.divf %41, %42 : vector<1x32xf32>
    %44 = arith.mulf %39, %39 : vector<8x32xf32>
    %cst_16 = arith.constant dense<0.000000e+00> : vector<32xf32>
    %45 = vector.multi_reduction <add>, %44, %cst_16 [0] : vector<8x32xf32> to vector<32xf32>
    %46 = vector.shape_cast %45 : vector<32xf32> to vector<1x32xf32>
    %cst_17 = arith.constant 8.000000e+00 : f32
    %47 = vector.broadcast %cst_17 : f32 to vector<1x32xf32>
    %48 = arith.divf %46, %47 : vector<1x32xf32>
    %49 = arith.mulf %43, %43 : vector<1x32xf32>
    %50 = arith.subf %48, %49 : vector<1x32xf32>
    %c4 = arith.constant 4 : index
    %c0_18 = arith.constant 0 : index
    %51 = vector.load %arg3[%c4, %c0_18] : memref<24x32xf32, #tpu.memory_space<vmem>>, vector<1x32xf32>
    %cst_19 = arith.constant 9.99999974E-6 : f32
    %52 = vector.broadcast %cst_19 : f32 to vector<1x32xf32>
    %53 = arith.addf %50, %52 : vector<1x32xf32>
    %54 = math.rsqrt %53 : vector<1x32xf32>
    %55 = arith.mulf %51, %54 : vector<1x32xf32>
    %c5 = arith.constant 5 : index
    %c0_20 = arith.constant 0 : index
    %56 = vector.load %arg3[%c5, %c0_20] : memref<24x32xf32, #tpu.memory_space<vmem>>, vector<1x32xf32>
    %57 = arith.mulf %43, %55 : vector<1x32xf32>
    %58 = arith.subf %56, %57 : vector<1x32xf32>
    %59 = vector.broadcast %55 : vector<1x32xf32> to vector<8x32xf32>
    %60 = arith.mulf %39, %59 : vector<8x32xf32>
    %61 = vector.broadcast %58 : vector<1x32xf32> to vector<8x32xf32>
    %62 = arith.addf %60, %61 : vector<8x32xf32>
    %cst_21 = arith.constant 0.000000e+00 : f32
    %63 = vector.broadcast %cst_21 : f32 to vector<8x32xf32>
    %64 = arith.cmpf oge, %62, %63 : vector<8x32xf32>
    %cst_22 = arith.constant 0.00999999977 : f32
    %65 = vector.broadcast %cst_22 : f32 to vector<8x32xf32>
    %66 = arith.mulf %65, %62 : vector<8x32xf32>
    %67 = arith.select %64, %62, %66 : vector<8x32xi1>, vector<8x32xf32>
    %c96 = arith.constant 96 : index
    %c0_23 = arith.constant 0 : index
    %68 = vector.load %arg2[%c96, %c0_23] : memref<288x32xbf16, #tpu.memory_space<vmem>>, vector<32x32xbf16>
    %69 = arith.truncf %67 : vector<8x32xf32> to vector<8x32xbf16>
    %cst_24 = arith.constant dense<0.000000e+00> : vector<8x32xf32>
    %70 = tpu.matmul %69, %68, %cst_24 {dimension_numbers = #tpu.dot_dimension_numbers<[1], [0], [0], [1], [0, 0, 1, 1], [], []>} : vector<8x32xbf16>, vector<32x32xbf16>, vector<8x32xf32> -> vector<8x32xf32>
    %cst_25 = arith.constant dense<0.000000e+00> : vector<32xf32>
    %71 = vector.multi_reduction <add>, %70, %cst_25 [0] : vector<8x32xf32> to vector<32xf32>
    %72 = vector.shape_cast %71 : vector<32xf32> to vector<1x32xf32>
    %cst_26 = arith.constant 8.000000e+00 : f32
    %73 = vector.broadcast %cst_26 : f32 to vector<1x32xf32>
    %74 = arith.divf %72, %73 : vector<1x32xf32>
    %75 = arith.mulf %70, %70 : vector<8x32xf32>
    %cst_27 = arith.constant dense<0.000000e+00> : vector<32xf32>
    %76 = vector.multi_reduction <add>, %75, %cst_27 [0] : vector<8x32xf32> to vector<32xf32>
    %77 = vector.shape_cast %76 : vector<32xf32> to vector<1x32xf32>
    %cst_28 = arith.constant 8.000000e+00 : f32
    %78 = vector.broadcast %cst_28 : f32 to vector<1x32xf32>
    %79 = arith.divf %77, %78 : vector<1x32xf32>
    %80 = arith.mulf %74, %74 : vector<1x32xf32>
    %81 = arith.subf %79, %80 : vector<1x32xf32>
    %c7 = arith.constant 7 : index
    %c0_29 = arith.constant 0 : index
    %82 = vector.load %arg3[%c7, %c0_29] : memref<24x32xf32, #tpu.memory_space<vmem>>, vector<1x32xf32>
    %cst_30 = arith.constant 9.99999974E-6 : f32
    %83 = vector.broadcast %cst_30 : f32 to vector<1x32xf32>
    %84 = arith.addf %81, %83 : vector<1x32xf32>
    %85 = math.rsqrt %84 : vector<1x32xf32>
    %86 = arith.mulf %82, %85 : vector<1x32xf32>
    %c8 = arith.constant 8 : index
    %c0_31 = arith.constant 0 : index
    %87 = vector.load %arg3[%c8, %c0_31] : memref<24x32xf32, #tpu.memory_space<vmem>>, vector<1x32xf32>
    %88 = arith.mulf %74, %86 : vector<1x32xf32>
    %89 = arith.subf %87, %88 : vector<1x32xf32>
    %90 = vector.broadcast %86 : vector<1x32xf32> to vector<8x32xf32>
    %91 = arith.mulf %70, %90 : vector<8x32xf32>
    %92 = vector.broadcast %89 : vector<1x32xf32> to vector<8x32xf32>
    %93 = arith.addf %91, %92 : vector<8x32xf32>
    %cst_32 = arith.constant 0.000000e+00 : f32
    %94 = vector.broadcast %cst_32 : f32 to vector<8x32xf32>
    %95 = arith.cmpf oge, %93, %94 : vector<8x32xf32>
    %cst_33 = arith.constant 0.00999999977 : f32
    %96 = vector.broadcast %cst_33 : f32 to vector<8x32xf32>
    %97 = arith.mulf %96, %93 : vector<8x32xf32>
    %98 = arith.select %95, %93, %97 : vector<8x32xi1>, vector<8x32xf32>
    %c128 = arith.constant 128 : index
    %c0_34 = arith.constant 0 : index
    %99 = vector.load %arg2[%c128, %c0_34] : memref<288x32xbf16, #tpu.memory_space<vmem>>, vector<32x32xbf16>
    %100 = arith.truncf %98 : vector<8x32xf32> to vector<8x32xbf16>
    %cst_35 = arith.constant dense<0.000000e+00> : vector<8x32xf32>
    %101 = tpu.matmul %100, %99, %cst_35 {dimension_numbers = #tpu.dot_dimension_numbers<[1], [0], [0], [1], [0, 0, 1, 1], [], []>} : vector<8x32xbf16>, vector<32x32xbf16>, vector<8x32xf32> -> vector<8x32xf32>
    %c9 = arith.constant 9 : index
    %c0_36 = arith.constant 0 : index
    %102 = vector.load %arg3[%c9, %c0_36] : memref<24x32xf32, #tpu.memory_space<vmem>>, vector<1x32xf32>
    %103 = vector.broadcast %102 : vector<1x32xf32> to vector<8x32xf32>
    %104 = arith.addf %101, %103 : vector<8x32xf32>
    %105 = vector.extract_strided_slice %104 {offsets = [0, 0], sizes = [8, 8], strides = [1, 1]} : vector<8x32xf32> to vector<8x8xf32>
    %106 = vector.extract_strided_slice %104 {offsets = [0, 8], sizes = [8, 8], strides = [1, 1]} : vector<8x32xf32> to vector<8x8xf32>
    %cst_37 = arith.constant 0.000000e+00 : f32
    %107 = vector.broadcast %cst_37 : f32 to vector<8x8xf32>
    %108 = arith.maximumf %106, %107 : vector<8x8xf32>
    %109 = math.absf %106 : vector<8x8xf32>
    %cst_38 = arith.constant 0.000000e+00 : f32
    %110 = vector.broadcast %cst_38 : f32 to vector<8x8xf32>
    %111 = arith.subf %110, %109 : vector<8x8xf32>
    %112 = math.exp %111 : vector<8x8xf32>
    %cst_39 = arith.constant 1.000000e+00 : f32
    %113 = vector.broadcast %cst_39 : f32 to vector<8x8xf32>
    %114 = arith.addf %113, %112 : vector<8x8xf32>
    %115 = math.log %114 : vector<8x8xf32>
    %116 = arith.addf %108, %115 : vector<8x8xf32>
    %cst_40 = arith.constant 1.1920929E-7 : f32
    %117 = vector.broadcast %cst_40 : f32 to vector<8x8xf32>
    %118 = arith.addf %116, %117 : vector<8x8xf32>
    %119 = math.log %118 : vector<8x8xf32>
    %cst_41 = arith.constant 1.1920929E-7 : f32
    %120 = vector.broadcast %cst_41 : f32 to vector<8x8xf32>
    %121 = arith.addf %116, %120 : vector<8x8xf32>
    %122 = math.sqrt %121 : vector<8x8xf32>
    %123 = arith.mulf %122, %2 : vector<8x8xf32>
    %124 = arith.addf %105, %123 : vector<8x8xf32>
    %cst_42 = arith.constant 1.1920929E-7 : f32
    %125 = vector.broadcast %cst_42 : f32 to vector<8x8xf32>
    %126 = arith.addf %116, %125 : vector<8x8xf32>
    %127 = arith.mulf %105, %105 : vector<8x8xf32>
    %128 = arith.addf %126, %127 : vector<8x8xf32>
    %129 = arith.subf %128, %119 : vector<8x8xf32>
    %cst_43 = arith.constant 1.000000e+00 : f32
    %130 = vector.broadcast %cst_43 : f32 to vector<8x8xf32>
    %131 = arith.subf %129, %130 : vector<8x8xf32>
    %cst_44 = arith.constant 5.000000e-01 : f32
    %132 = vector.broadcast %cst_44 : f32 to vector<8x8xf32>
    %133 = arith.mulf %132, %131 : vector<8x8xf32>
    %cst_45 = arith.constant dense<0.000000e+00> : vector<8xf32>
    %134 = vector.multi_reduction <add>, %133, %cst_45 [1] : vector<8x8xf32> to vector<8xf32>
    %135 = vector.shape_cast %134 : vector<8xf32> to vector<8x1xf32>
    %cst_46 = arith.constant dense<0.000000e+00> : vector<1xf32>
    %136 = vector.multi_reduction <add>, %135, %cst_46 [0] : vector<8x1xf32> to vector<1xf32>
    %137 = vector.shape_cast %136 : vector<1xf32> to vector<1x1xf32>
    %cst_47 = arith.constant 1.250000e-01 : f32
    %138 = vector.broadcast %cst_47 : f32 to vector<1x1xf32>
    %139 = arith.mulf %137, %138 : vector<1x1xf32>
    %c160 = arith.constant 160 : index
    %c0_48 = arith.constant 0 : index
    %140 = vector.load %arg2[%c160, %c0_48] : memref<288x32xbf16, #tpu.memory_space<vmem>>, vector<8x32xbf16>
    %141 = arith.truncf %124 : vector<8x8xf32> to vector<8x8xbf16>
    %cst_49 = arith.constant dense<0.000000e+00> : vector<8x32xf32>
    %142 = tpu.matmul %141, %140, %cst_49 {dimension_numbers = #tpu.dot_dimension_numbers<[1], [0], [0], [1], [0, 0, 1, 1], [], []>} : vector<8x8xbf16>, vector<8x32xbf16>, vector<8x32xf32> -> vector<8x32xf32>
    %cst_50 = arith.constant dense<0.000000e+00> : vector<32xf32>
    %143 = vector.multi_reduction <add>, %142, %cst_50 [0] : vector<8x32xf32> to vector<32xf32>
    %144 = vector.shape_cast %143 : vector<32xf32> to vector<1x32xf32>
    %cst_51 = arith.constant 8.000000e+00 : f32
    %145 = vector.broadcast %cst_51 : f32 to vector<1x32xf32>
    %146 = arith.divf %144, %145 : vector<1x32xf32>
    %147 = arith.mulf %142, %142 : vector<8x32xf32>
    %cst_52 = arith.constant dense<0.000000e+00> : vector<32xf32>
    %148 = vector.multi_reduction <add>, %147, %cst_52 [0] : vector<8x32xf32> to vector<32xf32>
    %149 = vector.shape_cast %148 : vector<32xf32> to vector<1x32xf32>
    %cst_53 = arith.constant 8.000000e+00 : f32
    %150 = vector.broadcast %cst_53 : f32 to vector<1x32xf32>
    %151 = arith.divf %149, %150 : vector<1x32xf32>
    %152 = arith.mulf %146, %146 : vector<1x32xf32>
    %153 = arith.subf %151, %152 : vector<1x32xf32>
    %c13 = arith.constant 13 : index
    %c0_54 = arith.constant 0 : index
    %154 = vector.load %arg3[%c13, %c0_54] : memref<24x32xf32, #tpu.memory_space<vmem>>, vector<1x32xf32>
    %cst_55 = arith.constant 9.99999974E-6 : f32
    %155 = vector.broadcast %cst_55 : f32 to vector<1x32xf32>
    %156 = arith.addf %153, %155 : vector<1x32xf32>
    %157 = math.rsqrt %156 : vector<1x32xf32>
    %158 = arith.mulf %154, %157 : vector<1x32xf32>
    %c14 = arith.constant 14 : index
    %c0_56 = arith.constant 0 : index
    %159 = vector.load %arg3[%c14, %c0_56] : memref<24x32xf32, #tpu.memory_space<vmem>>, vector<1x32xf32>
    %160 = arith.mulf %146, %158 : vector<1x32xf32>
    %161 = arith.subf %159, %160 : vector<1x32xf32>
    %162 = vector.broadcast %158 : vector<1x32xf32> to vector<8x32xf32>
    %163 = arith.mulf %142, %162 : vector<8x32xf32>
    %164 = vector.broadcast %161 : vector<1x32xf32> to vector<8x32xf32>
    %165 = arith.addf %163, %164 : vector<8x32xf32>
    %cst_57 = arith.constant 0.000000e+00 : f32
    %166 = vector.broadcast %cst_57 : f32 to vector<8x32xf32>
    %167 = arith.cmpf oge, %165, %166 : vector<8x32xf32>
    %cst_58 = arith.constant 0.00999999977 : f32
    %168 = vector.broadcast %cst_58 : f32 to vector<8x32xf32>
    %169 = arith.mulf %168, %165 : vector<8x32xf32>
    %170 = arith.select %167, %165, %169 : vector<8x32xi1>, vector<8x32xf32>
    %c192 = arith.constant 192 : index
    %c0_59 = arith.constant 0 : index
    %171 = vector.load %arg2[%c192, %c0_59] : memref<288x32xbf16, #tpu.memory_space<vmem>>, vector<32x32xbf16>
    %172 = arith.truncf %170 : vector<8x32xf32> to vector<8x32xbf16>
    %cst_60 = arith.constant dense<0.000000e+00> : vector<8x32xf32>
    %173 = tpu.matmul %172, %171, %cst_60 {dimension_numbers = #tpu.dot_dimension_numbers<[1], [0], [0], [1], [0, 0, 1, 1], [], []>} : vector<8x32xbf16>, vector<32x32xbf16>, vector<8x32xf32> -> vector<8x32xf32>
    %cst_61 = arith.constant dense<0.000000e+00> : vector<32xf32>
    %174 = vector.multi_reduction <add>, %173, %cst_61 [0] : vector<8x32xf32> to vector<32xf32>
    %175 = vector.shape_cast %174 : vector<32xf32> to vector<1x32xf32>
    %cst_62 = arith.constant 8.000000e+00 : f32
    %176 = vector.broadcast %cst_62 : f32 to vector<1x32xf32>
    %177 = arith.divf %175, %176 : vector<1x32xf32>
    %178 = arith.mulf %173, %173 : vector<8x32xf32>
    %cst_63 = arith.constant dense<0.000000e+00> : vector<32xf32>
    %179 = vector.multi_reduction <add>, %178, %cst_63 [0] : vector<8x32xf32> to vector<32xf32>
    %180 = vector.shape_cast %179 : vector<32xf32> to vector<1x32xf32>
    %cst_64 = arith.constant 8.000000e+00 : f32
    %181 = vector.broadcast %cst_64 : f32 to vector<1x32xf32>
    %182 = arith.divf %180, %181 : vector<1x32xf32>
    %183 = arith.mulf %177, %177 : vector<1x32xf32>
    %184 = arith.subf %182, %183 : vector<1x32xf32>
    %c16 = arith.constant 16 : index
    %c0_65 = arith.constant 0 : index
    %185 = vector.load %arg3[%c16, %c0_65] : memref<24x32xf32, #tpu.memory_space<vmem>>, vector<1x32xf32>
    %cst_66 = arith.constant 9.99999974E-6 : f32
    %186 = vector.broadcast %cst_66 : f32 to vector<1x32xf32>
    %187 = arith.addf %184, %186 : vector<1x32xf32>
    %188 = math.rsqrt %187 : vector<1x32xf32>
    %189 = arith.mulf %185, %188 : vector<1x32xf32>
    %c17 = arith.constant 17 : index
    %c0_67 = arith.constant 0 : index
    %190 = vector.load %arg3[%c17, %c0_67] : memref<24x32xf32, #tpu.memory_space<vmem>>, vector<1x32xf32>
    %191 = arith.mulf %177, %189 : vector<1x32xf32>
    %192 = arith.subf %190, %191 : vector<1x32xf32>
    %193 = vector.broadcast %189 : vector<1x32xf32> to vector<8x32xf32>
    %194 = arith.mulf %173, %193 : vector<8x32xf32>
    %195 = vector.broadcast %192 : vector<1x32xf32> to vector<8x32xf32>
    %196 = arith.addf %194, %195 : vector<8x32xf32>
    %cst_68 = arith.constant 0.000000e+00 : f32
    %197 = vector.broadcast %cst_68 : f32 to vector<8x32xf32>
    %198 = arith.cmpf oge, %196, %197 : vector<8x32xf32>
    %cst_69 = arith.constant 0.00999999977 : f32
    %199 = vector.broadcast %cst_69 : f32 to vector<8x32xf32>
    %200 = arith.mulf %199, %196 : vector<8x32xf32>
    %201 = arith.select %198, %196, %200 : vector<8x32xi1>, vector<8x32xf32>
    %c224 = arith.constant 224 : index
    %c0_70 = arith.constant 0 : index
    %202 = vector.load %arg2[%c224, %c0_70] : memref<288x32xbf16, #tpu.memory_space<vmem>>, vector<32x32xbf16>
    %203 = arith.truncf %201 : vector<8x32xf32> to vector<8x32xbf16>
    %cst_71 = arith.constant dense<0.000000e+00> : vector<8x32xf32>
    %204 = tpu.matmul %203, %202, %cst_71 {dimension_numbers = #tpu.dot_dimension_numbers<[1], [0], [0], [1], [0, 0, 1, 1], [], []>} : vector<8x32xbf16>, vector<32x32xbf16>, vector<8x32xf32> -> vector<8x32xf32>
    %cst_72 = arith.constant dense<0.000000e+00> : vector<32xf32>
    %205 = vector.multi_reduction <add>, %204, %cst_72 [0] : vector<8x32xf32> to vector<32xf32>
    %206 = vector.shape_cast %205 : vector<32xf32> to vector<1x32xf32>
    %cst_73 = arith.constant 8.000000e+00 : f32
    %207 = vector.broadcast %cst_73 : f32 to vector<1x32xf32>
    %208 = arith.divf %206, %207 : vector<1x32xf32>
    %209 = arith.mulf %204, %204 : vector<8x32xf32>
    %cst_74 = arith.constant dense<0.000000e+00> : vector<32xf32>
    %210 = vector.multi_reduction <add>, %209, %cst_74 [0] : vector<8x32xf32> to vector<32xf32>
    %211 = vector.shape_cast %210 : vector<32xf32> to vector<1x32xf32>
    %cst_75 = arith.constant 8.000000e+00 : f32
    %212 = vector.broadcast %cst_75 : f32 to vector<1x32xf32>
    %213 = arith.divf %211, %212 : vector<1x32xf32>
    %214 = arith.mulf %208, %208 : vector<1x32xf32>
    %215 = arith.subf %213, %214 : vector<1x32xf32>
    %c19 = arith.constant 19 : index
    %c0_76 = arith.constant 0 : index
    %216 = vector.load %arg3[%c19, %c0_76] : memref<24x32xf32, #tpu.memory_space<vmem>>, vector<1x32xf32>
    %cst_77 = arith.constant 9.99999974E-6 : f32
    %217 = vector.broadcast %cst_77 : f32 to vector<1x32xf32>
    %218 = arith.addf %215, %217 : vector<1x32xf32>
    %219 = math.rsqrt %218 : vector<1x32xf32>
    %220 = arith.mulf %216, %219 : vector<1x32xf32>
    %c20 = arith.constant 20 : index
    %c0_78 = arith.constant 0 : index
    %221 = vector.load %arg3[%c20, %c0_78] : memref<24x32xf32, #tpu.memory_space<vmem>>, vector<1x32xf32>
    %222 = arith.mulf %208, %220 : vector<1x32xf32>
    %223 = arith.subf %221, %222 : vector<1x32xf32>
    %224 = vector.broadcast %220 : vector<1x32xf32> to vector<8x32xf32>
    %225 = arith.mulf %204, %224 : vector<8x32xf32>
    %226 = vector.broadcast %223 : vector<1x32xf32> to vector<8x32xf32>
    %227 = arith.addf %225, %226 : vector<8x32xf32>
    %cst_79 = arith.constant 0.000000e+00 : f32
    %228 = vector.broadcast %cst_79 : f32 to vector<8x32xf32>
    %229 = arith.cmpf oge, %227, %228 : vector<8x32xf32>
    %cst_80 = arith.constant 0.00999999977 : f32
    %230 = vector.broadcast %cst_80 : f32 to vector<8x32xf32>
    %231 = arith.mulf %230, %227 : vector<8x32xf32>
    %232 = arith.select %229, %227, %231 : vector<8x32xi1>, vector<8x32xf32>
    %c256 = arith.constant 256 : index
    %c0_81 = arith.constant 0 : index
    %233 = vector.load %arg2[%c256, %c0_81] : memref<288x32xbf16, #tpu.memory_space<vmem>>, vector<32x32xbf16>
    %234 = arith.truncf %232 : vector<8x32xf32> to vector<8x32xbf16>
    %cst_82 = arith.constant dense<0.000000e+00> : vector<8x32xf32>
    %235 = tpu.matmul %234, %233, %cst_82 {dimension_numbers = #tpu.dot_dimension_numbers<[1], [0], [0], [1], [0, 0, 1, 1], [], []>} : vector<8x32xbf16>, vector<32x32xbf16>, vector<8x32xf32> -> vector<8x32xf32>
    %c21 = arith.constant 21 : index
    %c0_83 = arith.constant 0 : index
    %236 = vector.load %arg3[%c21, %c0_83] : memref<24x32xf32, #tpu.memory_space<vmem>>, vector<1x32xf32>
    %237 = vector.broadcast %236 : vector<1x32xf32> to vector<8x32xf32>
    %238 = arith.addf %235, %237 : vector<8x32xf32>
    %239 = math.tanh %238 : vector<8x32xf32>
    %240 = vector.extract_strided_slice %239 {offsets = [0, 13], sizes = [8, 13], strides = [1, 1]} : vector<8x32xf32> to vector<8x13xf32>
    %241 = vector.extract_strided_slice %239 {offsets = [0, 0], sizes = [8, 13], strides = [1, 1]} : vector<8x32xf32> to vector<8x13xf32>
    %242 = math.absf %241 : vector<8x13xf32>
    %243 = math.absf %240 : vector<8x13xf32>
    %244 = arith.maximumf %242, %243 : vector<8x13xf32>
    %245 = arith.minimumf %242, %243 : vector<8x13xf32>
    %cst_84 = arith.constant 1.000000e-30 : f32
    %246 = vector.broadcast %cst_84 : f32 to vector<8x13xf32>
    %247 = arith.maximumf %244, %246 : vector<8x13xf32>
    %248 = arith.divf %245, %247 : vector<8x13xf32>
    %249 = arith.mulf %248, %248 : vector<8x13xf32>
    %cst_85 = arith.constant -0.00405405788 : f32
    %250 = vector.broadcast %cst_85 : f32 to vector<8x13xf32>
    %251 = arith.mulf %250, %249 : vector<8x13xf32>
    %cst_86 = arith.constant 0.0218612291 : f32
    %252 = vector.broadcast %cst_86 : f32 to vector<8x13xf32>
    %253 = arith.addf %251, %252 : vector<8x13xf32>
    %254 = arith.mulf %253, %249 : vector<8x13xf32>
    %cst_87 = arith.constant -0.055909887 : f32
    %255 = vector.broadcast %cst_87 : f32 to vector<8x13xf32>
    %256 = arith.addf %254, %255 : vector<8x13xf32>
    %257 = arith.mulf %256, %249 : vector<8x13xf32>
    %cst_88 = arith.constant 0.0964200422 : f32
    %258 = vector.broadcast %cst_88 : f32 to vector<8x13xf32>
    %259 = arith.addf %257, %258 : vector<8x13xf32>
    %260 = arith.mulf %259, %249 : vector<8x13xf32>
    %cst_89 = arith.constant -0.139085338 : f32
    %261 = vector.broadcast %cst_89 : f32 to vector<8x13xf32>
    %262 = arith.addf %260, %261 : vector<8x13xf32>
    %263 = arith.mulf %262, %249 : vector<8x13xf32>
    %cst_90 = arith.constant 0.199465364 : f32
    %264 = vector.broadcast %cst_90 : f32 to vector<8x13xf32>
    %265 = arith.addf %263, %264 : vector<8x13xf32>
    %266 = arith.mulf %265, %249 : vector<8x13xf32>
    %cst_91 = arith.constant -0.333298564 : f32
    %267 = vector.broadcast %cst_91 : f32 to vector<8x13xf32>
    %268 = arith.addf %266, %267 : vector<8x13xf32>
    %269 = arith.mulf %268, %249 : vector<8x13xf32>
    %cst_92 = arith.constant 0.999999344 : f32
    %270 = vector.broadcast %cst_92 : f32 to vector<8x13xf32>
    %271 = arith.addf %269, %270 : vector<8x13xf32>
    %272 = arith.mulf %271, %248 : vector<8x13xf32>
    %273 = arith.cmpf ogt, %243, %242 : vector<8x13xf32>
    %cst_93 = arith.constant 1.57079637 : f32
    %274 = vector.broadcast %cst_93 : f32 to vector<8x13xf32>
    %275 = arith.subf %274, %272 : vector<8x13xf32>
    %276 = arith.select %273, %275, %272 : vector<8x13xi1>, vector<8x13xf32>
    %cst_94 = arith.constant 0.000000e+00 : f32
    %277 = vector.broadcast %cst_94 : f32 to vector<8x13xf32>
    %278 = arith.cmpf olt, %241, %277 : vector<8x13xf32>
    %cst_95 = arith.constant 3.14159274 : f32
    %279 = vector.broadcast %cst_95 : f32 to vector<8x13xf32>
    %280 = arith.subf %279, %276 : vector<8x13xf32>
    %281 = arith.select %278, %280, %276 : vector<8x13xi1>, vector<8x13xf32>
    %cst_96 = arith.constant 0.000000e+00 : f32
    %282 = vector.broadcast %cst_96 : f32 to vector<8x13xf32>
    %283 = arith.cmpf olt, %240, %282 : vector<8x13xf32>
    %cst_97 = arith.constant 0.000000e+00 : f32
    %284 = vector.broadcast %cst_97 : f32 to vector<8x13xf32>
    %285 = arith.subf %284, %281 : vector<8x13xf32>
    %286 = arith.select %283, %285, %281 : vector<8x13xi1>, vector<8x13xf32>
    %287 = arith.subf %1, %286 : vector<8x13xf32>
    %cst_98 = arith.constant 0.159154937 : f32
    %288 = vector.broadcast %cst_98 : f32 to vector<8x13xf32>
    %289 = arith.mulf %287, %288 : vector<8x13xf32>
    %cst_99 = arith.constant 5.000000e-01 : f32
    %290 = vector.broadcast %cst_99 : f32 to vector<8x13xf32>
    %291 = arith.addf %289, %290 : vector<8x13xf32>
    %292 = math.floor %291 : vector<8x13xf32>
    %cst_100 = arith.constant 6.28318548 : f32
    %293 = vector.broadcast %cst_100 : f32 to vector<8x13xf32>
    %294 = arith.mulf %293, %292 : vector<8x13xf32>
    %295 = arith.subf %287, %294 : vector<8x13xf32>
    %cst_101 = arith.constant 5.000000e-01 : f32
    %296 = vector.broadcast %cst_101 : f32 to vector<8x13xf32>
    %297 = arith.mulf %296, %295 : vector<8x13xf32>
    %298 = arith.mulf %297, %295 : vector<8x13xf32>
    %cst_102 = arith.constant dense<0.000000e+00> : vector<8xf32>
    %299 = vector.multi_reduction <add>, %298, %cst_102 [1] : vector<8x13xf32> to vector<8xf32>
    %300 = vector.shape_cast %299 : vector<8xf32> to vector<8x1xf32>
    %cst_103 = arith.constant dense<0.000000e+00> : vector<1xf32>
    %301 = vector.multi_reduction <add>, %300, %cst_103 [0] : vector<8x1xf32> to vector<1xf32>
    %302 = vector.shape_cast %301 : vector<1xf32> to vector<1x1xf32>
    %cst_104 = arith.constant 1.250000e-01 : f32
    %303 = vector.broadcast %cst_104 : f32 to vector<1x1xf32>
    %304 = arith.mulf %302, %303 : vector<1x1xf32>
    %cst_105 = arith.constant 11.9462013 : f32
    %305 = vector.broadcast %cst_105 : f32 to vector<1x1xf32>
    %306 = arith.addf %304, %305 : vector<1x1xf32>
    %307 = vector.shape_cast %139 : vector<1x1xf32> to vector<1x1xf32>
    %308 = vector.broadcast %307 : vector<1x1xf32> to vector<8x1xf32>
    %309 = vector.shape_cast %306 : vector<1x1xf32> to vector<1x1xf32>
    %310 = vector.broadcast %309 : vector<1x1xf32> to vector<8x1xf32>
    %311 = tpu.concatenate %124, %286, %308, %310 in 1 : vector<8x8xf32>, vector<8x13xf32>, vector<8x1xf32>, vector<8x1xf32> -> vector<8x23xf32>
    %c0_106 = arith.constant 0 : index
    %c0_107 = arith.constant 0 : index
    %312 = vector.load %arg4[%c0_106, %c0_107] : memref<8x23xf32, #tpu.memory_space<vmem>>, vector<8x23xf32>
    tpu.vector_store %arg4[%c0_106, %c0_107], %311 {strides = array<i32>} : memref<8x23xf32, #tpu.memory_space<vmem>>, vector<8x23xf32>,
    return
  }
  func.func @transform_0(%arg0: i32) -> (i32, i32) {
    %c0_i32 = arith.constant 0 : i32
    %c0_i32_0 = arith.constant 0 : i32
    %c0_i32_1 = arith.constant 0 : i32
    return %c0_i32, %c0_i32_0 : i32, i32
  }
  func.func @transform_1(%arg0: i32) -> (i32, i32) {
    %c0_i32 = arith.constant 0 : i32
    %c0_i32_0 = arith.constant 0 : i32
    %c0_i32_1 = arith.constant 0 : i32
    return %c0_i32, %c0_i32_0 : i32, i32
  }
  func.func @transform_2(%arg0: i32) -> (i32, i32) {
    %c0_i32 = arith.constant 0 : i32
    %c0_i32_0 = arith.constant 0 : i32
    %c0_i32_1 = arith.constant 0 : i32
    return %c0_i32, %c0_i32_0 : i32, i32
  }
  func.func @transform_3(%arg0: i32) -> (i32, i32) {
    %c0_i32 = arith.constant 0 : i32
    %c0_i32_0 = arith.constant 0 : i32
    %c0_i32_1 = arith.constant 0 : i32
    return %c0_i32, %c0_i32_0 : i32, i32
  }
}

</mosaic_0001>

<bundles_post_ra>
// kernel: vae_forward.1
= control target key start
LH: loop header
LB: loop body
LE: loop exit
PB: predicated region body
PF: predicated region fallthrough
CT: control target
= control target key end

     0   :  { %v1173_v12 = vmov 683565275   ;;  %v1174_v14 = vmov 2475754826   ;;  %v1175_v16 = vmov 2131351028   ;;  %s1432_s0 = inlined_call_operand.vmem [shape: f32[8,32], index: 0, kind: input, shape index: {}]   ;;  %s1433_s1 = inlined_call_operand.vmem [shape: bf16[288,32], index: 1, kind: input, shape index: {}]   ;;  %s1434_s2 = inlined_call_operand.vmem [shape: f32[24,32], index: 2, kind: input, shape index: {}]   ;;  %s1435_s3 = inlined_call_operand.vmem [shape: f32[8,23], index: 3, kind: output, shape index: {}]  }
   0x1   :  { %v1210_v0 = vld [vmem:[%s1432_s0] sm:$0xff]  ;;  %v1176_v18 = vmov 2102212464   ;;  %v1177_v20 = vmov 920167782   ;;  %s1180_s20 = smov 32  }
   0x2   :  { %v19_v1 = vand.u32 2139095040, %v1210_v0  ;;  %v16_v3 = vand.u32 2147483647, %v1210_v0  ;;  %v1178_v26 = vmov 1326507024   ;;  %vm18_vm12 = vcmp.lt.s32.totalorder %v1210_v0, 0 }
   0x3   :  { %s1182_s12 = smov 123   ;;  %s1183_s25 = smov 120  }
   0x4   :  { %v20_v2 = vshrl.u32 %v19_v1, 23  ;;  %v23_v6 = vand.u32 8388607, %v16_v3  ;;  %v1179_v1 = vmov 0   ;;  %vm17_vm13 = vcmp.le.f32.partialorder %v16_v3, 0.7853982 }
   0x5   :  { %s1184_s26 = smov 13   ;;  %s1185_s27 = smov 115  }
   0x6   :  { %v1035_v4 = vadd.s32 4294967169, %v20_v2  ;;  %v24_v9 = vor.u32 8388608, %v23_v6 }
   0x8   :  { %v26_v5 = vadd.s32 1, %v1035_v4  ;;  %v1219_v28 = vshll.u32 %v24_v9, 8 }
   0xa   :  { %vm27_vm0 = vcmp.gt.s32.totalorder %v26_v5, 0  ;;  %v65_v40 = vand.u32 65535, %v1219_v28  ;;  %v66_v41 = vshrl.u32 %v1219_v28, 16 }
   0xb   :  { %v28_v7 = vsel %vm27_vm0, %v26_v5, 0 }
   0xc   :  { %v30_v8 = vand.u32 31, %v28_v7  ;;  %v1216_v10 = vshrl.u32 %v28_v7, 5 }
   0xe   :  { %v31_v11 = vsub.s32 32, %v30_v8  ;;  %v33_v13 = vshll.u32 %v1173_v12, %v30_v8  ;;  %v36_v15 = vshll.u32 %v1174_v14, %v30_v8  ;;  %v39_v17 = vshll.u32 %v1175_v16, %v30_v8 }
   0xf   :  { %v42_v19 = vshll.u32 %v1176_v18, %v30_v8  ;;  %v45_v21 = vshll.u32 %v1177_v20, %v30_v8  ;;  %vm48_vm1 = vcmp.lt.s32.totalorder %v1216_v10, 1  ;;  %vm51_vm2 = vcmp.lt.s32.totalorder %v1216_v10, 4 }
  0x10   :  { %v34_v22 = vshrl.u32 %v1174_v14, %v31_v11  ;;  %v37_v23 = vshrl.u32 %v1175_v16, %v31_v11  ;;  %v40_v24 = vshrl.u32 %v1176_v18, %v31_v11  ;;  %v43_v25 = vshrl.u32 %v1177_v20, %v31_v11 }
  0x11   :  { %v46_v27 = vshrl.u32 %v1178_v26, %v31_v11  ;;  %vm50_vm3 = vcmp.lt.s32.totalorder %v1216_v10, 3  ;;  %vm49_vm4 = vcmp.lt.s32.totalorder %v1216_v10, 2  ;;  %v32_v48 = vshrl.u32 %v1173_v12, %v31_v11 }
  0x12   :  { %v35_v29 = vor.u32 %v34_v22, %v33_v13  ;;  %v38_v30 = vor.u32 %v37_v23, %v36_v15  ;;  %v41_v31 = vor.u32 %v40_v24, %v39_v17  ;;  %v44_v32 = vor.u32 %v43_v25, %v42_v19 }
  0x13   :  { %v47_v33 = vor.u32 %v46_v27, %v45_v21 }
  0x14   :  { %v56_v34 = vsel %vm48_vm1, %v35_v29, %v38_v30  ;;  %v60_v35 = vsel %vm48_vm1, %v38_v30, %v41_v31  ;;  %v57_v36 = vsel %vm51_vm2, %v44_v32, 920167782  ;;  %v52_v61 = vsel %vm48_vm1, %v32_v48, %v35_v29 }
  0x15   :  { %v61_v37 = vsel %vm51_vm2, %v47_v33, 1326507024  ;;  %v58_v38 = vsel %vm50_vm3, %v41_v31, %v57_v36  ;;  %v53_v63 = vsel %vm51_vm2, %v41_v31, 2102212464 }
  0x16   :  { %v62_v39 = vsel %vm50_vm3, %v44_v32, %v61_v37  ;;  %v59_v42 = vsel %vm49_vm4, %v56_v34, %v58_v38  ;;  %v54_v12 = vsel %vm50_vm3, %v38_v30, %v53_v63 }
  0x17   :  { %v63_v43 = vsel %vm49_vm4, %v60_v35, %v62_v39  ;;  %v89_v46 = vand.u32 65535, %v59_v42  ;;  %v90_v47 = vshrl.u32 %v59_v42, 16  ;;  %v55_v20 = vsel %vm49_vm4, %v52_v61, %v54_v12 }
  0x18   :  { %v67_v44 = vand.u32 65535, %v63_v43  ;;  %v68_v45 = vshrl.u32 %v63_v43, 16  ;;  %v109_v24 = vmul.u32 %v1219_v28, %v55_v20  ;;  %vm159_vm4 = vweird.f32 %v1210_v0 }
  0x19   :  { %v91_v52 = vmul.u32 %v89_v46, %v65_v40  ;;  %v92_v53 = vmul.u32 %v90_v47, %v65_v40  ;;  %v93_v54 = vmul.u32 %v89_v46, %v66_v41  ;;  %v94_v58 = vmul.u32 %v90_v47, %v66_v41  ;;  %v1116_v47 = vld [vmem:[%s1433_s1 + $0x10] sm:$0xff] }
  0x1a   :  { %v69_v49 = vmul.u32 %v67_v44, %v65_v40  ;;  %v70_v50 = vmul.u32 %v68_v45, %v65_v40  ;;  %v71_v51 = vmul.u32 %v67_v44, %v66_v41  ;;  %v72_v55 = vmul.u32 %v68_v45, %v66_v41  ;;  %v1117_v44 = vld [vmem:[%s1433_s1 + $0x18] sm:$0xff] }
  0x1b   :  { %v95_v59 = vshll.u32 %v92_v53, 16  ;;  %v97_v60 = vshll.u32 %v93_v54, 16  ;;  %v96_v9 = vshrl.u32 %v92_v53, 16  ;;  %v98_v16 = vshrl.u32 %v93_v54, 16  ;;  %372 = vmatpush.bf16.msra.mxu0 %v1117_v44 }
  0x1c   :  { %v73_v56 = vshll.u32 %v70_v50, 16  ;;  %v75_v57 = vshll.u32 %v71_v51, 16  ;;  %v74_v5 = vshrl.u32 %v70_v50, 16  ;;  %v76_v13 = vshrl.u32 %v71_v51, 16  ;;  %v1115_v51 = vld [vmem:[%s1433_s1 + $0x8] sm:$0xff] }
  0x1d   :  { %vm99_vm6 = vc.u32 %v91_v52, %v95_v59  ;;  %v101_v4 = vadd.s32 %v95_v59, %v91_v52 }
  0x1e   :  { %vm77_vm5 = vc.u32 %v69_v49, %v73_v56  ;;  %v79_v62 = vadd.s32 %v73_v56, %v69_v49  ;;  %v100_v7 = vsel %vm99_vm6, 1, %v1179_v1  ;;  %vm364_vm6 = vcmask 523264  }
  0x1f   :  { %v78_v2 = vsel %vm77_vm5, 1, %v1179_v1  ;;  %v102_v11 = vadd.s32 %v100_v7, %v94_v58  ;;  %vm103_vm8 = vc.u32 %v101_v4, %v97_v60  ;;  %v105_v19 = vadd.s32 %v101_v4, %v97_v60  ;;  %373 = vmatpush.bf16.msra.mxu0 %v1116_v47 }
  0x20   :  { %v80_v6 = vadd.s32 %v78_v2, %v72_v55  ;;  %vm81_vm7 = vc.u32 %v79_v62, %v75_v57  ;;  %v104_v15 = vsel %vm103_vm8, 1, %v1179_v1  ;;  %vm329_vm5 = vcmask 261120  }
  0x21   :  { %v82_v8 = vsel %vm81_vm7, 1, %v1179_v1  ;;  %v106_v17 = vadd.s32 %v104_v15, %v102_v11 }
  0x22   :  { %v84_v14 = vadd.s32 %v82_v8, %v80_v6 }
  0x23   :  { %v107_v21 = vadd.s32 %v106_v17, %v96_v9  ;;  %374 = vmatpush.bf16.msra.mxu0 %v1115_v51 }
  0x24   :  { %v85_v18 = vadd.s32 %v84_v14, %v74_v5 }
  0x25   :  { %v108_v23 = vadd.s32 %v107_v21, %v98_v16 }
  0x26   :  { %v86_v22 = vadd.s32 %v85_v18, %v76_v13 }
  0x27   :  { %v112_v25 = vadd.s32 1, %v108_v23 }
  0x28   :  { %vm111_vm9 = vc.u32 %v86_v22, %v105_v19  ;;  %v110_v10 = vadd.s32 %v105_v19, %v86_v22  ;;  %v1114_v22 = vld [vmem:[%s1433_s1] sm:$0xff] }
  0x29   :  { %v113_v26 = vsel %vm111_vm9, %v112_v25, %v108_v23  ;;  %375 = vmatpush.bf16.msra.mxu0 %v1114_v22 }
  0x2a   :  { %v114_v27 = vadd.s32 %v113_v26, %v109_v24  ;;  %v1181_v26 = vmov 8.0  }
  0x2b   :  { %1146 = vrcp.f32 %v1181_v26 }
  0x2c   :  { %v115_v29 = vadd.s32 536870912, %v114_v27 }
  0x2e   :  { %v116_v30 = vshrl.u32 %v115_v29, 30 }
  0x30   :  { %v117_v31 = vshll.u32 %v116_v30, 30  ;;  %v140_v50 = vsub.s32 4, %v116_v30 }
  0x32   :  { %v118_v32 = vsub.s32 %v114_v27, %v117_v31  ;;  %v141_v54 = vsel %vm18_vm12, %v140_v50, %v116_v30  ;;  %v1147_v27 = vpop.eup %1146  ;;  %v1119_v50 = vld [vmem:[%s1433_s1 + $0x28] sm:$0xff] }
  0x33   :  { %v143_v57 = vsel %vm17_vm13, 0, %v141_v54  ;;  %v389_v29 = vmul.f32 8.0, %v1147_v27  ;;  %vm393_vm7 = vweird.f32 %v1147_v27  ;;  %456 = vmatpush.bf16.msra.mxu1 %v1119_v50 }
  0x34   :  { %vm119_vm10 = vcmp.lt.s32.totalorder %v118_v32, 0  ;;  %v120_v33 = vsub.s32 0, %v118_v32  ;;  %v314_v62 = vadd.s32 3, %v143_v57  ;;  %v160_v5 = vand.u32 3, %v143_v57 }
  0x35   :  { %v390_v30 = vsub.f32 1.0, %v389_v29 }
  0x36   :  { %v121_v34 = vsel %vm119_vm10, %v120_v33, %v118_v32  ;;  %v315_v6 = vand.u32 3, %v314_v62  ;;  %vm165_vm14 = vcmp.eq.s32.totalorder %v160_v5, 2  ;;  %vm161_vm0 = vcmp.lt.s32.totalorder %v160_v5, 2 }
  0x37   :  { %v122_v35 = vclz %v121_v34  ;;  %vm162_vm1 = vcmp.eq.s32.totalorder %v160_v5, 0 }
  0x38   :  { %vm320_vm15 = vcmp.eq.s32.totalorder %v315_v6, 2  ;;  %vm317_vm2 = vcmp.eq.s32.totalorder %v315_v6, 0  ;;  %vm316_vm3 = vcmp.lt.s32.totalorder %v315_v6, 2 }
  0x39   :  { %v1036_v36 = vadd.s32 4294967294, %v122_v35  ;;  %v391_v35 = vmul.f32 %v1147_v27, %v390_v30 }
  0x3b   :  { %vm1037_vm11 = vcmp.lt.s32.totalorder %v1036_v36, 0 }
  0x3c   :  { %v125_v37 = vsel %vm1037_vm11, 0, %v1036_v36 }
  0x3d   :  { %v126_v38 = vsub.s32 32, %v125_v37  ;;  %v127_v39 = vshll.u32 %v118_v32, %v125_v37  ;;  %v130_v40 = vsub.s32 4294967266, %v125_v37 }
  0x3f   :  { %v128_v28 = vshrl.u32 %v110_v10, %v126_v38  ;;  %v131_v41 = vadd.s32 127, %v130_v40  ;;  %v392_v40 = vadd.f32 %v1147_v27, %v391_v35  ;;  %v1120_v35 = vld [vmem:[%s1433_s1 + $0x30] sm:$0xff] }
  0x41   :  { %v129_v42 = vor.u32 %v128_v28, %v127_v39  ;;  %v132_v43 = vshll.u32 %v131_v41, 23 }
  0x43   :  { %v133_v45 = vor.u32 4788187, %v132_v43  ;;  %v136_v46 = vcvt.s32.f32 %v129_v42 }
  0x45   :  { %v134_v48 = vand.u32 2147483647, %v133_v45  ;;  %v1271_v45 = vsel %vm393_vm7, %v1147_v27, %v392_v40 }
  0x47   :  { %v137_v49 = vmul.f32 %v136_v46, %v134_v48 }
  0x49   :  { %v138_v52 = vxor.u32 2147483648, %v137_v49 }
  0x4b   :  { %v139_v53 = vsel %vm18_vm12, %v138_v52, %v137_v49 }
  0x4c   :  { %v142_v55 = vsel %vm17_vm13, %v1210_v0, %v139_v53  ;;  %v1118_v53 = vld [vmem:[%s1433_s1 + $0x20] sm:$0xff] }
  0x4d   :  { %v144_v56 = vmul.f32 %v142_v55, %v142_v55  ;;  %457 = vmatpush.bf16.msra.mxu1 %v1118_v53 }
  0x4f   :  { %v145_v58 = vmul.f32 -0.001358992, %v144_v56  ;;  %v152_v59 = vmul.f32 -0.00019511016, %v144_v56 }
  0x51   :  { %v146_v60 = vadd.f32 0.041655596, %v145_v58  ;;  %v153_v61 = vadd.f32 0.008332121, %v152_v59 }
  0x53   :  { %v147_v63 = vmul.f32 %v146_v60, %v144_v56  ;;  %v154_v1 = vmul.f32 %v153_v61, %v144_v56  ;;  %v407_v61 = vld [vmem:[%s1434_s2 + $0x1] sm:$0x1] }
  0x55   :  { %v148_v2 = vadd.f32 -0.4999988, %v147_v63  ;;  %v155_v4 = vadd.f32 -0.16666654, %v154_v1 }
  0x57   :  { %v149_v3 = vmul.f32 %v148_v2, %v144_v56  ;;  %v156_v7 = vmul.f32 %v155_v4, %v144_v56  ;;  %v420_v2 = vld [vmem:[%s1434_s2 + $0x2] sm:$0x1] }
  0x59   :  { %v150_v8 = vadd.f32 1.0, %v149_v3  ;;  %v157_v9 = vadd.f32 1.0, %v156_v7 }
  0x5b   :  { %v158_v11 = vmul.f32 %v157_v9, %v142_v55  ;;  %v166_v12 = vxor.u32 2147483648, %v150_v8 }
  0x5d   :  { %v163_v13 = vxor.u32 2147483648, %v158_v11  ;;  %v322_v14 = vsel %vm320_vm15, %v166_v12, %v158_v11  ;;  %v167_v15 = vsel %vm165_vm14, %v166_v12, %v158_v11 }
  0x5f   :  { %v319_v16 = vsel %vm317_vm2, %v150_v8, %v163_v13  ;;  %v164_v17 = vsel %vm162_vm1, %v150_v8, %v163_v13 }
  0x60   :  { %v323_v18 = vsel %vm316_vm3, %v319_v16, %v322_v14  ;;  %v168_v19 = vsel %vm161_vm0, %v164_v17, %v167_v15 }
  0x61   :  { %v324_v20 = vsel %vm159_vm4, nan, %v323_v18  ;;  %v169_v21 = vsel %vm159_vm4, nan, %v168_v19  ;;  %vm678_vm4 = vcmask 1043456  }
  0x62   :  { %326 = vrot.lane.b32.xlu0 %v324_v20, %s1180_s20 }
  0x6a   :  { %640 = vrot.lane.b32.xlu0 %v1210_v0, %s1182_s12 }
  0xd4   :  { %v327_v23 = vpop.permute.xlu0 %326 }
  0xd5   :  { %v330_v24 = vsel %vm329_vm5, %v169_v21, %v327_v23 }
  0xd6   :  { %v339_v25 = vpack.c.bf16 %v330_v24, %v330_v24 }
  0xd8   :  { %1057 = vmatmul.msk.bf16.vlgmr.msra.gmra.mxu0 %vm364_vm6, %v339_v25 }
 0x155   :  { %v377_v31 = vpop.f32.mrf.mxu0 }
 0x156   :  { %v381_v32 = vsel %vm329_vm5, %v377_v31, 0.0  ;;  %v396_v33 = vmul.f32 %v377_v31, %v377_v31 }
 0x157   :  { %v382_v34 = vrot.slane %v381_v32, 4 }
 0x158   :  { %v397_v36 = vsel %vm329_vm5, %v396_v33, 0.0 }
 0x159   :  { %v383_v10 = vadd.f32 %v382_v34, %v381_v32  ;;  %v398_v37 = vrot.slane %v397_v36, 4  ;;  %v1121_v32 = vld [vmem:[%s1433_s1 + $0x38] sm:$0xff] }
 0x15a   :  { %531 = vmatpush.bf16.msra.mxu2 %v1121_v32 }
 0x15b   :  { %v384_v38 = vrot.slane %v383_v10, 2  ;;  %v399_v39 = vadd.f32 %v398_v37, %v397_v36 }
 0x15d   :  { %v385_v28 = vadd.f32 %v384_v38, %v383_v10  ;;  %v400_v41 = vrot.slane %v399_v39, 2  ;;  %v379_v42 = vpop.f32.mrf.mxu0 }
 0x15e   :  { %532 = vmatpush.bf16.msra.mxu2 %v1120_v35 }
 0x15f   :  { %v386_v43 = vrot.slane %v385_v28, 1  ;;  %v401_v44 = vadd.f32 %v400_v41, %v399_v39  ;;  %v482_v41 = vld [vmem:[%s1434_s2 + $0x4] sm:$0x1] }
 0x161   :  { %v387_v46 = vadd.f32 %v386_v43, %v385_v28  ;;  %v402_v47 = vrot.slane %v401_v44, 1 }
 0x163   :  { %v395_v48 = vmul.f32 %v1271_v45, %v387_v46  ;;  %v403_v49 = vadd.f32 %v402_v47, %v401_v44  ;;  %v495_v46 = vld [vmem:[%s1434_s2 + $0x5] sm:$0x1] }
 0x165   :  { %v404_v51 = vmul.f32 %v403_v49, %v1271_v45  ;;  %v405_v52 = vmul.f32 %v395_v48, %v395_v48 }
 0x167   :  { %v406_v54 = vsub.f32 %v404_v51, %v405_v52 }
 0x169   :  { %v408_v55 = vadd.f32 1e-05, %v406_v54 }
 0x16b   :  { %1148 = vrsqrt.f32 %v408_v55  ;;  %vm415_vm9 = vweird.f32 %v408_v55 }
 0x171   :  { %v1149_v56 = vpop.eup %1148 }
 0x172   :  { %v410_v57 = vmul.f32 %v1149_v56, %v408_v55  ;;  %vm416_vm8 = vweird.f32 %v1149_v56 }
 0x173   :  { %vm417_vm10 = vmor %vm415_vm9, %vm416_vm8  ;;  %vm662_vm8 = vcmask 64512  }
 0x174   :  { %v411_v58 = vmul.f32 %v1149_v56, %v410_v57 }
 0x176   :  { %v412_v59 = vmul.f32 0.5, %v411_v58 }
 0x178   :  { %v413_v60 = vsub.f32 1.5, %v412_v59 }
 0x17a   :  { %v414_v62 = vmul.f32 %v1149_v56, %v413_v60 }
 0x17c   :  { %v418_v63 = vsel %vm417_vm10, %v1149_v56, %v414_v62 }
 0x17d   :  { %v419_v1 = vmul.f32 %v418_v63, %v407_v61 }
 0x17f   :  { %v421_v4 = vmul.f32 %v419_v1, %v395_v48  ;;  %v423_v5 = vperm.slane %v419_v1, 0 }
 0x181   :  { %v422_v6 = vsub.f32 %v420_v2, %v421_v4  ;;  %v424_v3 = vmul.f32 %v423_v5, %v377_v31 }
 0x183   :  { %v425_v7 = vperm.slane %v422_v6, 0 }
 0x185   :  { %v426_v8 = vadd.f32 %v425_v7, %v424_v3 }
 0x187   :  { %vm427_vm11 = vcmp.ge.f32.partialorder %v426_v8, 0.0  ;;  %v428_v9 = vmul.f32 0.01, %v426_v8 }
 0x189   :  { %v429_v11 = vsel %vm427_vm11, %v426_v8, %v428_v9 }
 0x18a   :  { %v434_v12 = vpack.c.bf16 %v429_v11, %v429_v11  ;;  %v1123_v11 = vld [vmem:[%s1433_s1 + $0x48] sm:$0xff] }
 0x18b   :  { %608 = vmatpush.bf16.msra.mxu3 %v1123_v11 }
 0x18c   :  { %1066 = vmatmul.msk.bf16.vlgmr.msra.gmra.mxu1 %vm329_vm5, %v434_v12 }
 0x209   :  { %v459_v13 = vpop.f32.mrf.mxu1 }
 0x20a   :  { %v463_v14 = vsel %vm329_vm5, %v459_v13, 0.0  ;;  %v471_v15 = vmul.f32 %v459_v13, %v459_v13 }
 0x20b   :  { %v464_v16 = vrot.slane %v463_v14, 4 }
 0x20c   :  { %v472_v17 = vsel %vm329_vm5, %v471_v15, 0.0 }
 0x20d   :  { %v465_v18 = vadd.f32 %v464_v16, %v463_v14  ;;  %v473_v19 = vrot.slane %v472_v17, 4  ;;  %v1122_v14 = vld [vmem:[%s1433_s1 + $0x40] sm:$0xff] }
 0x20e   :  { %609 = vmatpush.bf16.msra.mxu3 %v1122_v14 }
 0x20f   :  { %v466_v20 = vrot.slane %v465_v18, 2  ;;  %v474_v21 = vadd.f32 %v473_v19, %v472_v17 }
 0x211   :  { %v467_v22 = vadd.f32 %v466_v20, %v465_v18  ;;  %v475_v23 = vrot.slane %v474_v21, 2  ;;  %v461_v24 = vpop.f32.mrf.mxu1 }
 0x213   :  { %v468_v25 = vrot.slane %v467_v22, 1  ;;  %v476_v26 = vadd.f32 %v475_v23, %v474_v21 }
 0x215   :  { %v469_v27 = vadd.f32 %v468_v25, %v467_v22  ;;  %v477_v29 = vrot.slane %v476_v26, 1  ;;  %v557_v22 = vld [vmem:[%s1434_s2 + $0x7] sm:$0x1] }
 0x217   :  { %v470_v30 = vmul.f32 %v469_v27, %v1271_v45  ;;  %v478_v31 = vadd.f32 %v477_v29, %v476_v26  ;;  %v570_v26 = vld [vmem:[%s1434_s2 + $0x8] sm:$0x1] }
 0x219   :  { %v479_v33 = vmul.f32 %v478_v31, %v1271_v45  ;;  %v480_v34 = vmul.f32 %v470_v30, %v470_v30 }
 0x21b   :  { %v481_v36 = vsub.f32 %v479_v33, %v480_v34 }
 0x21d   :  { %v483_v10 = vadd.f32 1e-05, %v481_v36 }
 0x21f   :  { %1150 = vrsqrt.f32 %v483_v10  ;;  %vm490_vm13 = vweird.f32 %v483_v10 }
 0x225   :  { %v1151_v37 = vpop.eup %1150 }
 0x226   :  { %v485_v38 = vmul.f32 %v1151_v37, %v483_v10  ;;  %vm491_vm12 = vweird.f32 %v1151_v37  ;;  %v1144_v10 = vld [vmem:[%s1434_s2 + $0x9] ss:$0 sm:$0xff] }
 0x227   :  { %vm492_vm14 = vmor %vm490_vm13, %vm491_vm12 }
 0x228   :  { %v486_v39 = vmul.f32 %v1151_v37, %v485_v38 }
 0x22a   :  { %v487_v40 = vmul.f32 0.5, %v486_v39 }
 0x22c   :  { %v488_v28 = vsub.f32 1.5, %v487_v40 }
 0x22e   :  { %v489_v42 = vmul.f32 %v1151_v37, %v488_v28 }
 0x230   :  { %v493_v43 = vsel %vm492_vm14, %v1151_v37, %v489_v42 }
 0x231   :  { %v494_v44 = vmul.f32 %v493_v43, %v482_v41 }
 0x233   :  { %v496_v47 = vmul.f32 %v494_v44, %v470_v30  ;;  %v498_v48 = vperm.slane %v494_v44, 0  ;;  %v673_v44 = vld [vmem:[%s1433_s1 + $0x50] sm:$0xf] }
 0x235   :  { %v497_v49 = vsub.f32 %v495_v46, %v496_v47  ;;  %v499_v50 = vmul.f32 %v498_v48, %v459_v13  ;;  %v680_v46 = vsel %vm678_vm4, %v673_v44, 0 }
 0x236   :  { %689 = vmatpush.bf16.msrb.mxu1 %v680_v46 }
 0x237   :  { %v500_v51 = vperm.slane %v497_v49, 0 }
 0x239   :  { %v501_v52 = vadd.f32 %v500_v51, %v499_v50 }
 0x23b   :  { %vm502_vm15 = vcmp.ge.f32.partialorder %v501_v52, 0.0  ;;  %v503_v53 = vmul.f32 0.01, %v501_v52 }
 0x23d   :  { %v504_v54 = vsel %vm502_vm15, %v501_v52, %v503_v53 }
 0x23e   :  { %v509_v55 = vpack.c.bf16 %v504_v54, %v504_v54 }
 0x240   :  { %1075 = vmatmul.msk.bf16.vlgmr.msra.gmra.mxu2 %vm329_vm5, %v509_v55 }
 0x2c3   :  { %v534_v56 = vpop.f32.mrf.mxu2 }
 0x2c4   :  { %v538_v57 = vsel %vm329_vm5, %v534_v56, 0.0  ;;  %v546_v58 = vmul.f32 %v534_v56, %v534_v56 }
 0x2c5   :  { %v539_v59 = vrot.slane %v538_v57, 4 }
 0x2c6   :  { %v547_v60 = vsel %vm329_vm5, %v546_v58, 0.0 }
 0x2c7   :  { %v540_v61 = vadd.f32 %v539_v59, %v538_v57  ;;  %v548_v62 = vrot.slane %v547_v60, 4  ;;  %v641_v59 = vpop.permute.xlu0 %640 }
 0x2c9   :  { %v541_v63 = vrot.slane %v540_v61, 2  ;;  %v549_v1 = vadd.f32 %v548_v62, %v547_v60 }
 0x2cb   :  { %v542_v2 = vadd.f32 %v541_v63, %v540_v61  ;;  %v550_v4 = vrot.slane %v549_v1, 2  ;;  %v536_v5 = vpop.f32.mrf.mxu2 }
 0x2cd   :  { %v543_v6 = vrot.slane %v542_v2, 1  ;;  %v551_v3 = vadd.f32 %v550_v4, %v549_v1 }
 0x2cf   :  { %v544_v7 = vadd.f32 %v543_v6, %v542_v2  ;;  %v552_v8 = vrot.slane %v551_v3, 1 }
 0x2d1   :  { %v545_v0 = vmul.f32 %v544_v7, %v1271_v45  ;;  %v553_v9 = vadd.f32 %v552_v8, %v551_v3 }
 0x2d3   :  { %v554_v12 = vmul.f32 %v553_v9, %v1271_v45  ;;  %v555_v13 = vmul.f32 %v545_v0, %v545_v0 }
 0x2d5   :  { %v556_v15 = vsub.f32 %v554_v12, %v555_v13 }
 0x2d7   :  { %v558_v16 = vadd.f32 1e-05, %v556_v15 }
 0x2d9   :  { %1152 = vrsqrt.f32 %v558_v16  ;;  %vm565_vm1 = vweird.f32 %v558_v16 }
 0x2df   :  { %v1153_v17 = vpop.eup %1152 }
 0x2e0   :  { %v560_v18 = vmul.f32 %v1153_v17, %v558_v16  ;;  %vm566_vm0 = vweird.f32 %v1153_v17 }
 0x2e1   :  { %vm567_vm2 = vmor %vm565_vm1, %vm566_vm0 }
 0x2e2   :  { %v561_v19 = vmul.f32 %v1153_v17, %v560_v18 }
 0x2e4   :  { %v562_v20 = vmul.f32 0.5, %v561_v19 }
 0x2e6   :  { %v563_v21 = vsub.f32 1.5, %v562_v20 }
 0x2e8   :  { %v564_v23 = vmul.f32 %v1153_v17, %v563_v21 }
 0x2ea   :  { %v568_v24 = vsel %vm567_vm2, %v1153_v17, %v564_v23 }
 0x2eb   :  { %v569_v25 = vmul.f32 %v568_v24, %v557_v22  ;;  %v1125_v22 = vld [vmem:[%s1433_s1 + $0x68] sm:$0xff] }
 0x2ec   :  { %763 = vmatpush.bf16.msrb.mxu2 %v1125_v22 }
 0x2ed   :  { %v571_v27 = vmul.f32 %v569_v25, %v545_v0  ;;  %v573_v29 = vperm.slane %v569_v25, 0 }
 0x2ef   :  { %v572_v30 = vsub.f32 %v570_v26, %v571_v27  ;;  %v574_v31 = vmul.f32 %v573_v29, %v534_v56  ;;  %v1124_v26 = vld [vmem:[%s1433_s1 + $0x60] sm:$0xff] }
 0x2f0   :  { %764 = vmatpush.bf16.msrb.mxu2 %v1124_v26 }
 0x2f1   :  { %v575_v32 = vperm.slane %v572_v30, 0 }
 0x2f3   :  { %v576_v33 = vadd.f32 %v575_v32, %v574_v31 }
 0x2f5   :  { %vm577_vm3 = vcmp.ge.f32.partialorder %v576_v33, 0.0  ;;  %v578_v34 = vmul.f32 0.01, %v576_v33 }
 0x2f7   :  { %v579_v35 = vsel %vm577_vm3, %v576_v33, %v578_v34  ;;  %v714_v34 = vld [vmem:[%s1434_s2 + $0xd] sm:$0x1] }
 0x2f8   :  { %v584_v36 = vpack.c.bf16 %v579_v35, %v579_v35 }
 0x2fa   :  { %1084 = vmatmul.msk.bf16.vlgmr.msra.gmra.mxu3 %vm329_vm5, %v584_v36 }
 0x37d   :  { %v611_v37 = vpop.f32.mrf.mxu3 }
 0x37e   :  { %v1327_v38 = vadd.f32 %v1144_v10, %v611_v37  ;;  %v727_v37 = vld [vmem:[%s1434_s2 + $0xe] sm:$0x1] }
 0x380   :  { %v616_v39 = vand.u32 2147483647, %v1327_v38  ;;  %v615_v48 = vmax.f32 %v1327_v38, 0.0 }
 0x382   :  { %v617_v40 = vsub.f32 0.0, %v616_v39 }
 0x384   :  { %v618_v28 = vmul.f32 1.442695, %v617_v40 }
 0x385   :  { %v613_v41 = vpop.f32.mrf.mxu3 }
 0x386   :  { %1154 = vpow2.f32 %v618_v28 }
 0x38c   :  { %v1155_v42 = vpop.eup %1154 }
 0x38d   :  { %v620_v43 = vadd.f32 1.0, %v1155_v42 }
 0x38f   :  { %1156 = vlog2.f32 %v620_v43 }
 0x395   :  { %v1157_v47 = vpop.eup %1156 }
 0x396   :  { %v622_v49 = vmul.f32 0.6931472, %v1157_v47 }
 0x398   :  { %v623_v50 = vadd.f32 %v622_v49, %v615_v48 }
 0x39a   :  { %v1334_v51 = vadd.f32 1.1920929e-07, %v623_v50 }
 0x39c   :  { %1158 = vrsqrt.f32 %v1334_v51  ;;  %vm634_vm6 = vcmp.eq.f32.partialorder %v1334_v51, inf  ;;  %v637_v60 = vand.u32 2147483648, %v1334_v51  ;;  %vm636_vm7 = vcmp.eq.f32.partialorder %v1334_v51, 0.0 }
 0x3a2   :  { %v1159_v52 = vpop.eup %1158 }
 0x3a3   :  { %v628_v53 = vmul.f32 %v1159_v52, %v1334_v51 }
 0x3a5   :  { %v629_v54 = vmul.f32 %v1159_v52, %v628_v53 }
 0x3a7   :  { %v630_v55 = vmul.f32 0.5, %v629_v54 }
 0x3a9   :  { %v631_v56 = vsub.f32 1.5, %v630_v55 }
 0x3ab   :  { %v632_v57 = vmul.f32 %v1159_v52, %v631_v56 }
 0x3ad   :  { %v633_v58 = vmul.f32 %v632_v57, %v1334_v51 }
 0x3af   :  { %v635_v61 = vsel %vm634_vm6, %v1334_v51, %v633_v58 }
 0x3b0   :  { %v638_v62 = vsel %vm636_vm7, %v637_v60, %v635_v61 }
 0x3b1   :  { %v643_v63 = vmul.f32 %v641_v59, %v638_v62 }
 0x3b3   :  { %645 = vrot.lane.b32.xlu1 %v643_v63, %s1183_s25 }
 0x425   :  { %v646_v1 = vpop.permute.xlu1 %645 }
 0x426   :  { %v1345_v2 = vadd.f32 %v646_v1, %v1327_v38 }
 0x428   :  { %v674_v4 = vpack.c.bf16 %v1345_v2, %v1345_v2 }
 0x42a   :  { %1086 = vmatmul.msk.bf16.vlgmr.msrb.gmra.mxu1 %vm662_vm8, %v674_v4 }
 0x4a7   :  { %v691_v5 = vpop.f32.mrf.mxu1 }
 0x4a8   :  { %v695_v6 = vsel %vm329_vm5, %v691_v5, 0.0  ;;  %v703_v3 = vmul.f32 %v691_v5, %v691_v5 }
 0x4a9   :  { %v696_v7 = vrot.slane %v695_v6, 4 }
 0x4aa   :  { %v704_v8 = vsel %vm329_vm5, %v703_v3, 0.0 }
 0x4ab   :  { %v697_v0 = vadd.f32 %v696_v7, %v695_v6  ;;  %v705_v9 = vrot.slane %v704_v8, 4  ;;  %v1127_v6 = vld [vmem:[%s1433_s1 + $0x78] sm:$0xff] }
 0x4ac   :  { %838 = vmatpush.bf16.msrb.mxu3 %v1127_v6 }
 0x4ad   :  { %v698_v11 = vrot.slane %v697_v0, 2  ;;  %v706_v12 = vadd.f32 %v705_v9, %v704_v8 }
 0x4af   :  { %v699_v13 = vadd.f32 %v698_v11, %v697_v0  ;;  %v707_v14 = vrot.slane %v706_v12, 2  ;;  %v693_v15 = vpop.f32.mrf.mxu1  ;;  %v1126_v0 = vld [vmem:[%s1433_s1 + $0x70] sm:$0xff] }
 0x4b0   :  { %839 = vmatpush.bf16.msrb.mxu3 %v1126_v0 }
 0x4b1   :  { %v700_v16 = vrot.slane %v699_v13, 1  ;;  %v708_v17 = vadd.f32 %v707_v14, %v706_v12 }
 0x4b3   :  { %v701_v18 = vadd.f32 %v700_v16, %v699_v13  ;;  %v709_v19 = vrot.slane %v708_v17, 1  ;;  %v789_v16 = vld [vmem:[%s1434_s2 + $0x10] sm:$0x1] }
 0x4b5   :  { %v702_v20 = vmul.f32 %v701_v18, %v1271_v45  ;;  %v710_v21 = vadd.f32 %v709_v19, %v708_v17 }
 0x4b7   :  { %v711_v23 = vmul.f32 %v710_v21, %v1271_v45  ;;  %v712_v24 = vmul.f32 %v702_v20, %v702_v20 }
 0x4b9   :  { %v713_v25 = vsub.f32 %v711_v23, %v712_v24 }
 0x4bb   :  { %v715_v27 = vadd.f32 1e-05, %v713_v25 }
 0x4bd   :  { %1160 = vrsqrt.f32 %v715_v27  ;;  %vm722_vm10 = vweird.f32 %v715_v27 }
 0x4c3   :  { %v1161_v29 = vpop.eup %1160 }
 0x4c4   :  { %v717_v30 = vmul.f32 %v1161_v29, %v715_v27  ;;  %vm723_vm9 = vweird.f32 %v1161_v29 }
 0x4c5   :  { %vm724_vm11 = vmor %vm722_vm10, %vm723_vm9 }
 0x4c6   :  { %v718_v31 = vmul.f32 %v1161_v29, %v717_v30 }
 0x4c8   :  { %v719_v32 = vmul.f32 0.5, %v718_v31 }
 0x4ca   :  { %v720_v33 = vsub.f32 1.5, %v719_v32 }
 0x4cc   :  { %v721_v35 = vmul.f32 %v1161_v29, %v720_v33 }
 0x4ce   :  { %v725_v36 = vsel %vm724_vm11, %v1161_v29, %v721_v35 }
 0x4cf   :  { %v726_v10 = vmul.f32 %v725_v36, %v714_v34 }
 0x4d1   :  { %v728_v39 = vmul.f32 %v726_v10, %v702_v20  ;;  %v730_v40 = vperm.slane %v726_v10, 0  ;;  %v802_v20 = vld [vmem:[%s1434_s2 + $0x11] sm:$0x1] }
 0x4d3   :  { %v729_v28 = vsub.f32 %v727_v37, %v728_v39  ;;  %v731_v41 = vmul.f32 %v730_v40, %v691_v5 }
 0x4d5   :  { %v732_v42 = vperm.slane %v729_v28, 0 }
 0x4d7   :  { %v733_v43 = vadd.f32 %v732_v42, %v731_v41 }
 0x4d9   :  { %v735_v44 = vmul.f32 0.01, %v733_v43  ;;  %vm734_vm12 = vcmp.ge.f32.partialorder %v733_v43, 0.0 }
 0x4db   :  { %v736_v46 = vsel %vm734_vm12, %v733_v43, %v735_v44  ;;  %vm1009_vm12 = vcmask 105472  }
 0x4dc   :  { %v741_v47 = vpack.c.bf16 %v736_v46, %v736_v46 }
 0x4de   :  { %1095 = vmatmul.msk.bf16.vlgmr.msrb.gmra.mxu2 %vm329_vm5, %v741_v47 }
 0x561   :  { %v766_v48 = vpop.f32.mrf.mxu2 }
 0x562   :  { %v770_v49 = vsel %vm329_vm5, %v766_v48, 0.0  ;;  %v778_v50 = vmul.f32 %v766_v48, %v766_v48 }
 0x563   :  { %v771_v52 = vrot.slane %v770_v49, 4 }
 0x564   :  { %v779_v53 = vsel %vm329_vm5, %v778_v50, 0.0 }
 0x565   :  { %v772_v54 = vadd.f32 %v771_v52, %v770_v49  ;;  %v780_v55 = vrot.slane %v779_v53, 4  ;;  %v1129_v49 = vld [vmem:[%s1433_s1 + $0x88] sm:$0xff] }
 0x566   :  { %915 = vmatpush.bf16.msrb.mxu0 %v1129_v49 }
 0x567   :  { %v773_v56 = vrot.slane %v772_v54, 2  ;;  %v781_v57 = vadd.f32 %v780_v55, %v779_v53 }
 0x569   :  { %v774_v58 = vadd.f32 %v773_v56, %v772_v54  ;;  %v782_v59 = vrot.slane %v781_v57, 2  ;;  %v768_v60 = vpop.f32.mrf.mxu2  ;;  %v1128_v54 = vld [vmem:[%s1433_s1 + $0x80] sm:$0xff] }
 0x56a   :  { %916 = vmatpush.bf16.msrb.mxu0 %v1128_v54 }
 0x56b   :  { %v775_v61 = vrot.slane %v774_v58, 1  ;;  %v783_v62 = vadd.f32 %v782_v59, %v781_v57 }
 0x56d   :  { %v776_v63 = vadd.f32 %v775_v61, %v774_v58  ;;  %v784_v1 = vrot.slane %v783_v62, 1 }
 0x56f   :  { %v777_v4 = vmul.f32 %v776_v63, %v1271_v45  ;;  %v785_v5 = vadd.f32 %v784_v1, %v783_v62  ;;  %v877_v1 = vld [vmem:[%s1434_s2 + $0x14] sm:$0x1] }
 0x571   :  { %v786_v3 = vmul.f32 %v785_v5, %v1271_v45  ;;  %v787_v7 = vmul.f32 %v777_v4, %v777_v4 }
 0x573   :  { %v788_v8 = vsub.f32 %v786_v3, %v787_v7 }
 0x575   :  { %v790_v9 = vadd.f32 1e-05, %v788_v8 }
 0x577   :  { %1162 = vrsqrt.f32 %v790_v9  ;;  %vm797_vm14 = vweird.f32 %v790_v9 }
 0x57d   :  { %v1163_v11 = vpop.eup %1162 }
 0x57e   :  { %v792_v12 = vmul.f32 %v1163_v11, %v790_v9  ;;  %vm798_vm13 = vweird.f32 %v1163_v11 }
 0x57f   :  { %vm799_vm15 = vmor %vm797_vm14, %vm798_vm13  ;;  %vm1025_vm13 = vcmask 171008   ;;  %vm1027_vm14 = vcmask 179200  }
 0x580   :  { %v793_v13 = vmul.f32 %v1163_v11, %v792_v12  ;;  %v1145_v12 = vld [vmem:[%s1434_s2 + $0x15] ss:$0 sm:$0xff] }
 0x582   :  { %v794_v14 = vmul.f32 0.5, %v793_v13 }
 0x584   :  { %v795_v15 = vsub.f32 1.5, %v794_v14 }
 0x586   :  { %v796_v17 = vmul.f32 %v1163_v11, %v795_v15 }
 0x588   :  { %v800_v18 = vsel %vm799_vm15, %v1163_v11, %v796_v17  ;;  %vm1029_vm15 = vcmask 187392  }
 0x589   :  { %v801_v19 = vmul.f32 %v800_v18, %v789_v16 }
 0x58b   :  { %v803_v21 = vmul.f32 %v801_v19, %v777_v4  ;;  %v805_v22 = vperm.slane %v801_v19, 0 }
 0x58d   :  { %v804_v23 = vsub.f32 %v802_v20, %v803_v21  ;;  %v806_v24 = vmul.f32 %v805_v22, %v766_v48 }
 0x58f   :  { %v807_v25 = vperm.slane %v804_v23, 0 }
 0x591   :  { %v808_v26 = vadd.f32 %v807_v25, %v806_v24 }
 0x593   :  { %v810_v27 = vmul.f32 0.01, %v808_v26  ;;  %vm809_vm0 = vcmp.ge.f32.partialorder %v808_v26, 0.0 }
 0x595   :  { %v811_v29 = vsel %vm809_vm0, %v808_v26, %v810_v27 }
 0x596   :  { %v816_v30 = vpack.c.bf16 %v811_v29, %v811_v29 }
 0x598   :  { %1104 = vmatmul.msk.bf16.vlgmr.msrb.gmra.mxu3 %vm329_vm5, %v816_v30 }
 0x61b   :  { %v841_v31 = vpop.f32.mrf.mxu3 }
 0x61c   :  { %v845_v32 = vsel %vm329_vm5, %v841_v31, 0.0  ;;  %v853_v33 = vmul.f32 %v841_v31, %v841_v31 }
 0x61d   :  { %v846_v34 = vrot.slane %v845_v32, 4 }
 0x61e   :  { %v854_v35 = vsel %vm329_vm5, %v853_v33, 0.0 }
 0x61f   :  { %v847_v36 = vadd.f32 %v846_v34, %v845_v32  ;;  %v855_v10 = vrot.slane %v854_v35, 4 }
 0x621   :  { %v848_v37 = vrot.slane %v847_v36, 2  ;;  %v856_v39 = vadd.f32 %v855_v10, %v854_v35 }
 0x623   :  { %v849_v40 = vadd.f32 %v848_v37, %v847_v36  ;;  %v857_v28 = vrot.slane %v856_v39, 2  ;;  %v843_v41 = vpop.f32.mrf.mxu3 }
 0x625   :  { %v850_v42 = vrot.slane %v849_v40, 1  ;;  %v858_v43 = vadd.f32 %v857_v28, %v856_v39 }
 0x627   :  { %v851_v44 = vadd.f32 %v850_v42, %v849_v40  ;;  %v859_v46 = vrot.slane %v858_v43, 1 }
 0x629   :  { %v852_v47 = vmul.f32 %v851_v44, %v1271_v45  ;;  %v860_v48 = vadd.f32 %v859_v46, %v858_v43 }
 0x62b   :  { %v861_v50 = vmul.f32 %v860_v48, %v1271_v45  ;;  %v862_v52 = vmul.f32 %v852_v47, %v852_v47  ;;  %v864_v45 = vld [vmem:[%s1434_s2 + $0x13] sm:$0x1]  ;;  %s1186_s2 = smov 8  }
 0x62d   :  { %v863_v53 = vsub.f32 %v861_v50, %v862_v52 }
 0x62f   :  { %v865_v55 = vadd.f32 1e-05, %v863_v53 }
 0x631   :  { %1164 = vrsqrt.f32 %v865_v55  ;;  %vm872_vm2 = vweird.f32 %v865_v55 }
 0x637   :  { %v1165_v56 = vpop.eup %1164 }
 0x638   :  { %v867_v57 = vmul.f32 %v1165_v56, %v865_v55  ;;  %vm873_vm1 = vweird.f32 %v1165_v56 }
 0x639   :  { %vm874_vm3 = vmor %vm872_vm2, %vm873_vm1 }
 0x63a   :  { %v868_v58 = vmul.f32 %v1165_v56, %v867_v57  ;;  %v649_v57 = vmul.f32 %v1327_v38, %v1327_v38 }
 0x63c   :  { %v869_v59 = vmul.f32 0.5, %v868_v58 }
 0x63e   :  { %v870_v60 = vsub.f32 1.5, %v869_v59 }
 0x640   :  { %v871_v61 = vmul.f32 %v1165_v56, %v870_v60 }
 0x642   :  { %v875_v62 = vsel %vm874_vm3, %v1165_v56, %v871_v61 }
 0x643   :  { %v876_v63 = vmul.f32 %v875_v62, %v864_v45 }
 0x645   :  { %v878_v4 = vmul.f32 %v876_v63, %v852_v47  ;;  %v880_v5 = vperm.slane %v876_v63, 0 }
 0x647   :  { %v879_v6 = vsub.f32 %v877_v1, %v878_v4  ;;  %v881_v3 = vmul.f32 %v880_v5, %v841_v31 }
 0x649   :  { %v882_v7 = vperm.slane %v879_v6, 0 }
 0x64b   :  { %v883_v8 = vadd.f32 %v882_v7, %v881_v3 }
 0x64d   :  { %v885_v0 = vmul.f32 0.01, %v883_v8  ;;  %vm884_vm4 = vcmp.ge.f32.partialorder %v883_v8, 0.0 }
 0x64f   :  { %v886_v9 = vsel %vm884_vm4, %v883_v8, %v885_v0 }
 0x650   :  { %v891_v11 = vpack.c.bf16 %v886_v9, %v886_v9  ;;  %v1172_v9 = vld [vmem:[%s1432_s0] sm:$0xff] }
 0x652   :  { %1113 = vmatmul.msk.bf16.vlgmr.msrb.gmra.mxu0 %vm329_vm5, %v891_v11 }
 0x6cf   :  { %v918_v13 = vpop.f32.mrf.mxu0 }
 0x6d0   :  { %v919_v14 = vadd.f32 %v1145_v12, %v918_v13 }
 0x6d2   :  { %1166 = vtanh.f32 %v919_v14 }
 0x6d7   :  { %v920_v15 = vpop.f32.mrf.mxu0 }
 0x6d8   :  { %v1404_v16 = vpop.eup %1166 }
 0x6d9   :  { %v923_v17 = vand.u32 2147483647, %v1404_v16  ;;  %vm976_vm11 = vcmp.lt.f32.partialorder %v1404_v16, 0.0 }
 0x6db   :  { %962 = vrot.lane.b32.xlu2 %v923_v17, %s1184_s26  ;;  %925 = vrot.lane.b32.xlu1 %v923_v17, %s1185_s27 }
 0x735   :  { %v963_v52 = vpop.permute.xlu2 %962 }
 0x736   :  { %vm965_vm10 = vcmp.gt.f32.partialorder %v923_v17, %v963_v52 }
 0x74d   :  { %v926_v18 = vpop.permute.xlu1 %925 }
 0x74e   :  { %v928_v19 = vmax.f32 %v923_v17, %v926_v18  ;;  %v929_v30 = vmin.f32 %v923_v17, %v926_v18 }
 0x750   :  { %v930_v20 = vmax.f32 %v928_v19, 1e-30 }
 0x752   :  { %1168 = vrcp.f32 %v930_v20  ;;  %v942_v24 = vand.u32 2147483648, %v930_v20  ;;  %v940_v26 = vand.u32 2147483647, %v930_v20  ;;  %vm936_vm6 = vweird.f32 %v930_v20 }
 0x753   :  { %1170 = vlog2.f32 %v1334_v51 }
 0x754   :  { %v943_v29 = vor.u32 1.1754944e-38, %v942_v24  ;;  %vm941_vm9 = vcmp.eq.f32.partialorder %v940_v26, 8.507059e+37 }
 0x758   :  { %v1169_v21 = vpop.eup %1168 }
 0x759   :  { %v932_v22 = vmul.f32 %v1169_v21, %v930_v20  ;;  %vm937_vm5 = vweird.f32 %v1169_v21  ;;  %v1171_v60 = vpop.eup %1170 }
 0x75a   :  { %vm938_vm7 = vmor %vm936_vm6, %vm937_vm5  ;;  %v626_v61 = vmul.f32 0.6931472, %v1171_v60 }
 0x75b   :  { %v933_v23 = vsub.f32 1.0, %v932_v22 }
 0x75d   :  { %v934_v25 = vmul.f32 %v1169_v21, %v933_v23 }
 0x75f   :  { %v935_v27 = vadd.f32 %v1169_v21, %v934_v25 }
 0x761   :  { %v939_v31 = vsel %vm938_vm7, %v1169_v21, %v935_v27 }
 0x762   :  { %v944_v32 = vsel %vm941_vm9, %v943_v29, %v939_v31 }
 0x763   :  { %v945_v33 = vmul.f32 %v944_v32, %v929_v30 }
 0x765   :  { %v946_v34 = vmul.f32 %v945_v33, %v945_v33 }
 0x767   :  { %v947_v35 = vmul.f32 -0.004054058, %v946_v34 }
 0x769   :  { %v948_v36 = vadd.f32 0.02186123, %v947_v35 }
 0x76b   :  { %v949_v10 = vmul.f32 %v948_v36, %v946_v34 }
 0x76d   :  { %v950_v37 = vadd.f32 -0.055909887, %v949_v10 }
 0x76f   :  { %v951_v39 = vmul.f32 %v950_v37, %v946_v34 }
 0x771   :  { %v952_v40 = vadd.f32 0.09642004, %v951_v39 }
 0x773   :  { %v953_v28 = vmul.f32 %v952_v40, %v946_v34 }
 0x775   :  { %v954_v41 = vadd.f32 -0.13908534, %v953_v28 }
 0x777   :  { %v955_v42 = vmul.f32 %v954_v41, %v946_v34 }
 0x779   :  { %v956_v43 = vadd.f32 0.19946536, %v955_v42 }
 0x77b   :  { %v957_v44 = vmul.f32 %v956_v43, %v946_v34 }
 0x77d   :  { %v958_v46 = vadd.f32 -0.33329856, %v957_v44 }
 0x77f   :  { %v959_v47 = vmul.f32 %v958_v46, %v946_v34 }
 0x781   :  { %v960_v48 = vadd.f32 0.99999934, %v959_v47 }
 0x783   :  { %v961_v49 = vmul.f32 %v960_v48, %v945_v33 }
 0x785   :  { %972 = vrot.lane.b32.xlu0 %v961_v49, %s1184_s26  ;;  %v966_v50 = vsub.f32 1.5707964, %v961_v49 }
 0x787   :  { %968 = vrot.lane.b32.xlu2 %v966_v50, %s1184_s26 }
 0x7e1   :  { %v969_v53 = vpop.permute.xlu2 %968 }
 0x7f7   :  { %v973_v54 = vpop.permute.xlu0 %972 }
 0x7f8   :  { %v975_v55 = vsel %vm965_vm10, %v969_v53, %v973_v54 }
 0x7f9   :  { %983 = vrot.lane.b32.xlu2 %v975_v55, %s1185_s27  ;;  %v977_v56 = vsub.f32 3.1415927, %v975_v55 }
 0x7fb   :  { %979 = vrot.lane.b32.xlu1 %v977_v56, %s1185_s27 }
 0x801   :  { %651 = vrot.lane.b32.xlu2 %v649_v57, %s1186_s2 }
 0x853   :  { %v984_v58 = vpop.permute.xlu2 %983 }
 0x85b   :  { %v652_v59 = vpop.permute.xlu2 %651 }
 0x85c   :  { %v654_v45 = vadd.f32 %v652_v59, %v1334_v51 }
 0x85e   :  { %v655_v62 = vsub.f32 %v654_v45, %v626_v61 }
 0x860   :  { %v1085_v5 = vadd.f32 -1.0, %v655_v62 }
 0x862   :  { %v657_v38 = vmul.f32 0.5, %v1085_v5 }
 0x86d   :  { %v980_v63 = vpop.permute.xlu1 %979 }
 0x86e   :  { %v986_v1 = vsel %vm976_vm11, %v980_v63, %v984_v58 }
 0x86f   :  { %993 = vrot.lane.b32.xlu1 %v986_v1, %s1184_s26  ;;  %v987_v4 = vsub.f32 0.0, %v986_v1 }
 0x871   :  { %989 = vrot.lane.b32.xlu0 %v987_v4, %s1184_s26 }
 0x877   :  { %659 = vrot.lane.b32.xlu1 %v657_v38, %s1183_s25 }
 0x8e1   :  { %v994_v6 = vpop.permute.xlu1 %993 }
 0x8e3   :  { %v990_v3 = vpop.permute.xlu0 %989 }
 0x8e4   :  { %v996_v7 = vsel %vm976_vm11, %v990_v3, %v994_v6 }
 0x8e5   :  { %1021 = vrot.lane.b32.xlu1 %v996_v7, %s1182_s12  ;;  %998 = vrot.lane.b32.xlu0 %v996_v7, %s1185_s27 }
 0x8e9   :  { %v660_v51 = vpop.permute.xlu1 %659 }
 0x8ea   :  { %v663_v8 = vsel %vm662_vm8, %v660_v51, 0.0 }
 0x90f   :  { %664 = vadd.xlane.f32.xlu0 %v663_v8 }
 0x957   :  { %v999_v0 = vpop.permute.xlu0 %998  ;;  %v1022_v35 = vpop.permute.xlu1 %1021 }
 0x958   :  { %v1001_v11 = vsub.f32 %v1172_v9, %v999_v0  ;;  %v1024_v37 = vsel %vm662_vm8, %v1345_v2, %v1022_v35 }
 0x95a   :  { %v1002_v12 = vmul.f32 0.15915494, %v1001_v11 }
 0x95c   :  { %v1003_v13 = vadd.f32 0.5, %v1002_v12 }
 0x95e   :  { %v1004_v14 = vfloor.f32 %v1003_v13 }
 0x960   :  { %v1005_v15 = vmul.f32 6.2831855, %v1004_v14 }
 0x962   :  { %v1006_v16 = vsub.f32 %v1001_v11, %v1005_v15 }
 0x964   :  { %v1007_v17 = vmul.f32 0.5, %v1006_v16 }
 0x966   :  { %v1008_v18 = vmul.f32 %v1007_v17, %v1006_v16 }
 0x968   :  { %v1010_v19 = vsel %vm1009_vm12, %v1008_v18, 0.0 }
 0x969   :  { %1011 = vadd.xlane.f32.xlu2 %v1010_v19 }
 0x982   :  { %v665_v20 = vpop.xlane.xlu0 %664 }
 0x983   :  { %v666_v21 = vrot.slane %v665_v20, 4 }
 0x985   :  { %v667_v22 = vadd.f32 %v666_v21, %v665_v20 }
 0x987   :  { %v668_v23 = vrot.slane %v667_v22, 2 }
 0x989   :  { %v669_v24 = vadd.f32 %v668_v23, %v667_v22 }
 0x98b   :  { %v670_v29 = vrot.slane %v669_v24, 1 }
 0x98d   :  { %v671_v32 = vadd.f32 %v670_v29, %v669_v24 }
 0x98f   :  { %v672_v36 = vmul.f32 0.125, %v671_v32 }
 0x991   :  { %v1026_v40 = vsel %vm1025_vm13, %v1024_v37, %v672_v36 }
 0x9dc   :  { %v1012_v25 = vpop.xlane.xlu2 %1011 }
 0x9dd   :  { %v1013_v26 = vrot.slane %v1012_v25, 4 }
 0x9df   :  { %v1014_v27 = vadd.f32 %v1013_v26, %v1012_v25 }
 0x9e1   :  { %v1015_v30 = vrot.slane %v1014_v27, 2 }
 0x9e3   :  { %v1016_v31 = vadd.f32 %v1015_v30, %v1014_v27 }
 0x9e5   :  { %v1017_v33 = vrot.slane %v1016_v31, 1 }
 0x9e7   :  { %v1018_v34 = vadd.f32 %v1017_v33, %v1016_v31 }
 0x9e9   :  { %v1019_v10 = vmul.f32 0.125, %v1018_v34 }
 0x9eb   :  { %v1020_v39 = vadd.f32 11.946201, %v1019_v10 }
 0x9ed   :  { %v1028_v28 = vsel %vm1027_vm14, %v1026_v40, %v1020_v39 }
 0x9ee   :  { %1030 = vst.msk [vmem:[%s1435_s3] sm:$0xff] %vm1029_vm15, %v1028_v28 }

</bundles_post_ra>
